<compile_context>
chip_gen: v5e
topology: v5e:2x2
jax: 0.10.0
libtpu: 0.0.40
codegen_flags: <defaults>
</compile_context>

<pallas_src>
import functools
import math

import jax
import jax.numpy as jnp
from jax import lax
from jax.experimental import pallas as pl
from jax.experimental.pallas import tpu as pltpu

# Safe scoped-VMEM limit on all generations (v5e/v6e: 128 MiB phys, v7x: 64 MiB).
_VMEM_LIMIT = 48 * 1024 * 1024


def _pick_tile(dim, candidates):
    """Largest candidate that evenly divides `dim`, else the full dim."""
    for c in candidates:
        if dim % c == 0:
            return c
    return dim


# ----------------------------------------------------------------------------
# Tiled linear (+ optional fused ReLU):  o = act(x @ w + b)
# ----------------------------------------------------------------------------

def _linear_kernel(x_ref, w_ref, b_ref, o_ref, acc_ref, *, activation):
    @pl.when(pl.program_id(2) == 0)
    def _init():
        acc_ref[...] = jnp.zeros_like(acc_ref)

    acc_ref[...] += jnp.dot(x_ref[...], w_ref[...],
                            preferred_element_type=jnp.float32)

    @pl.when(pl.program_id(2) == pl.num_programs(2) - 1)
    def _finalize():
        r = acc_ref[...] + b_ref[...]
        if activation == "relu":
            r = jnp.maximum(r, 0.0)
        o_ref[...] = r.astype(o_ref.dtype)


def pallas_linear(x, w, b, activation=None, out_dtype=jnp.float32):
    """x:(M,K), w:(K,N) [stored (in,out)], b:(N,) -> (M,N)."""
    M, K = x.shape
    Kw, N = w.shape
    assert Kw == K
    xb = x.astype(jnp.bfloat16)          # bf16 MXU inputs, f32 accumulation
    wb = w.astype(jnp.bfloat16)
    b2 = b.reshape(1, N).astype(jnp.float32)

    tm = _pick_tile(M, (256, 128, 64, 32, 16, 8))
    tn = _pick_tile(N, (512, 384, 256, 128))
    tk = _pick_tile(K, (512, 256, 128))
    grid = (M // tm, N // tn, K // tk)

    kernel = functools.partial(_linear_kernel, activation=activation)
    cost = pl.CostEstimate(
        flops=2 * M * N * K,
        transcendentals=0,
        bytes_accessed=2 * (M * K + K * N)
        + M * N * jnp.dtype(out_dtype).itemsize + 4 * N,
    )
    return pl.pallas_call(
        kernel,
        out_shape=jax.ShapeDtypeStruct((M, N), out_dtype),
        grid=grid,
        in_specs=[
            pl.BlockSpec((tm, tk), lambda i, j, k: (i, k)),
            pl.BlockSpec((tk, tn), lambda i, j, k: (k, j)),
            pl.BlockSpec((1, tn), lambda i, j, k: (0, j)),
        ],
        out_specs=pl.BlockSpec((tm, tn), lambda i, j, k: (i, j)),
        scratch_shapes=[pltpu.VMEM((tm, tn), jnp.float32)],
        compiler_params=pltpu.CompilerParams(
            dimension_semantics=("parallel", "parallel", "arbitrary"),
            vmem_limit_bytes=_VMEM_LIMIT),
        cost_estimate=cost,
    )(xb, wb, b2)


# ----------------------------------------------------------------------------
# Attention: one batch element per grid step, all heads packed in the block.
# Causal mask is generated in-kernel (no mask DMA); softmax stats in f32.
# ----------------------------------------------------------------------------

def _attn_kernel(q_ref, k_ref, v_ref, o_ref, *, scale, causal):
    q = q_ref[0]            # (H, Lq, hd) bf16
    k = k_ref[0]            # (H, Lk, hd) bf16
    v = v_ref[0]            # (H, Lk, hd) bf16
    s = jnp.einsum("hqd,hkd->hqk", q, k,
                   preferred_element_type=jnp.float32) * scale
    if causal:
        Lq, Lk = s.shape[1], s.shape[2]
        row = lax.broadcasted_iota(jnp.int32, (Lq, Lk), 0)
        col = lax.broadcasted_iota(jnp.int32, (Lq, Lk), 1)
        s = jnp.where(col <= row, s, -1e30)
    m = jnp.max(s, axis=-1, keepdims=True)
    p = jnp.exp(s - m)
    denom = jnp.sum(p, axis=-1, keepdims=True)
    p = p * pl.reciprocal(denom, approx=True)      # EUP, frees VALU slots
    o = jnp.einsum("hqk,hkd->hqd", p.astype(v.dtype), v,
                   preferred_element_type=jnp.float32)
    o_ref[0] = o.astype(o_ref.dtype)


def pallas_attention(q, k, v, scale, causal):
    """q:(B,H,Lq,hd) k,v:(B,H,Lk,hd) bf16 -> (B,H,Lq,hd) bf16."""
    B, H, Lq, hd = q.shape
    Lk = k.shape[2]
    kernel = functools.partial(_attn_kernel, scale=scale, causal=causal)
    return pl.pallas_call(
        kernel,
        out_shape=jax.ShapeDtypeStruct((B, H, Lq, hd), jnp.bfloat16),
        grid=(B,),
        in_specs=[
            pl.BlockSpec((1, H, Lq, hd), lambda b: (b, 0, 0, 0)),
            pl.BlockSpec((1, H, Lk, hd), lambda b: (b, 0, 0, 0)),
            pl.BlockSpec((1, H, Lk, hd), lambda b: (b, 0, 0, 0)),
        ],
        out_specs=pl.BlockSpec((1, H, Lq, hd), lambda b: (b, 0, 0, 0)),
        compiler_params=pltpu.CompilerParams(
            dimension_semantics=("parallel",),
            vmem_limit_bytes=_VMEM_LIMIT),
    )(q, k, v)


# ----------------------------------------------------------------------------
# Residual add + LayerNorm, tiled over rows (memory-bound)
# ----------------------------------------------------------------------------

def _add_ln_kernel(x_ref, res_ref, g_ref, b_ref, o_ref, *, eps):
    y = x_ref[...] + res_ref[...]
    mu = jnp.mean(y, axis=-1, keepdims=True)
    var = jnp.mean(jnp.square(y - mu), axis=-1, keepdims=True)
    o_ref[...] = (y - mu) * lax.rsqrt(var + eps) * g_ref[...] + b_ref[...]


def pallas_add_layernorm(x, res, gamma, beta, eps=1e-5):
    """x,res:(M,D); gamma,beta:(D,) -> LayerNorm(x+res) (M,D) f32."""
    M, D = x.shape
    tm = _pick_tile(M, (1024, 512, 256, 128, 64, 32, 16, 8))
    kernel = functools.partial(_add_ln_kernel, eps=eps)
    return pl.pallas_call(
        kernel,
        out_shape=jax.ShapeDtypeStruct((M, D), jnp.float32),
        grid=(M // tm,),
        in_specs=[
            pl.BlockSpec((tm, D), lambda i: (i, 0)),
            pl.BlockSpec((tm, D), lambda i: (i, 0)),
            pl.BlockSpec((1, D), lambda i: (0, 0)),
            pl.BlockSpec((1, D), lambda i: (0, 0)),
        ],
        out_specs=pl.BlockSpec((tm, D), lambda i: (i, 0)),
        compiler_params=pltpu.CompilerParams(
            dimension_semantics=("parallel",),
            vmem_limit_bytes=_VMEM_LIMIT),
    )(x.astype(jnp.float32), res.astype(jnp.float32),
      gamma.reshape(1, D), beta.reshape(1, D))


# ----------------------------------------------------------------------------
# Model glue (plain JAX around the Pallas kernels)
# ----------------------------------------------------------------------------

def _split_heads(x, B, L, H, hd):
    # (B*L, H*hd) -> (B, H, L, hd)
    return x.reshape(B, L, H, hd).transpose(0, 2, 1, 3)


def multihead_attention(x_q, x_kv, p, nhead, causal):
    """PyTorch nn.MultiheadAttention semantics (eval, no key_padding_mask)."""
    B, Lq, D = x_q.shape
    Lk = x_kv.shape[1]
    hd = D // nhead
    scale = 1.0 / math.sqrt(hd)

    if causal:
        # self-attention: one fused (D,3D) projection of x
        qkv = pallas_linear(x_q.reshape(B * Lq, D), p["w_qkv"], p["b_qkv"],
                            out_dtype=jnp.bfloat16)
        q, k, v = jnp.split(qkv, 3, axis=-1)
    else:
        # cross-attention: Q from the decoder stream, fused (D,2D) KV from memory
        q = pallas_linear(x_q.reshape(B * Lq, D), p["w_qkv"][:, :D],
                          p["b_qkv"][:D], out_dtype=jnp.bfloat16)
        kv = pallas_linear(x_kv.reshape(B * Lk, D), p["w_qkv"][:, D:],
                           p["b_qkv"][D:], out_dtype=jnp.bfloat16)
        k, v = jnp.split(kv, 2, axis=-1)

    q = _split_heads(q, B, Lq, nhead, hd)
    k = _split_heads(k, B, Lk, nhead, hd)
    v = _split_heads(v, B, Lk, nhead, hd)

    o = pallas_attention(q, k, v, scale, causal)            # (B, H, Lq, hd)
    o = o.transpose(0, 2, 1, 3).reshape(B * Lq, D)
    o = pallas_linear(o, p["w_out"], p["b_out"], out_dtype=jnp.float32)
    return o.reshape(B, Lq, D)


def decoder_layer(x, mem, p, nhead):
    """nn.TransformerDecoderLayer (post-norm, relu, eval mode)."""
    B, L, D = x.shape
    # self attention + residual + norm1
    sa = multihead_attention(x, x, p["self_attn"], nhead, causal=True)
    x = pallas_add_layernorm(
        x.reshape(-1, D), sa.reshape(-1, D), p["ln1_g"], p["ln1_b"]
    ).reshape(B, L, D)
    # cross attention + residual + norm2
    ca = multihead_attention(x, mem, p["cross_attn"], nhead, causal=False)
    x = pallas_add_layernorm(
        x.reshape(-1, D), ca.reshape(-1, D), p["ln2_g"], p["ln2_b"]
    ).reshape(B, L, D)
    # feed-forward (ReLU fused into first matmul epilogue) + residual + norm3
    h = pallas_linear(x.reshape(-1, D), p["w1"], p["b1"],
                      activation="relu", out_dtype=jnp.bfloat16)
    ff = pallas_linear(h, p["w2"], p["b2"], out_dtype=jnp.float32)
    x = pallas_add_layernorm(
        x.reshape(-1, D), ff, p["ln3_g"], p["ln3_b"]
    ).reshape(B, L, D)
    return x


def transformer_lm_forward(seq, memory, params, nhead):
    """
    seq:    (B, Lt) int32 token ids
    memory: (Lm, B, D) float32  (length x batch x dim, as the module asserts)
    returns (logits (B, Lt, V), hidden (B, Lt, D))
    """
    B, Lt = seq.shape
    D = params["embedding"].shape[1]
    V = params["vocab_pred_w"].shape[1]

    # TODO(synk): nn.Dropout layers (input_dropout / per-layer dropout) are
    # identity in eval mode; training-time dropout is not implemented.
    emb = jnp.take(params["embedding"], seq, axis=0)             # (B, Lt, D)
    x = emb + params["position"][:, :Lt, :]                      # positional enc

    mem = jnp.transpose(memory, (1, 0, 2)).astype(jnp.float32)   # (B, Lm, D)

    for p in params["layers"]:
        x = decoder_layer(x, mem, p, nhead)

    hidden = x                                                   # (B, Lt, D)
    logits = pallas_linear(
        x.reshape(-1, D), params["vocab_pred_w"], params["vocab_pred_b"]
    ).reshape(B, Lt, V)
    return logits, hidden


# ----------------------------------------------------------------------------
# Deterministic parameter construction (shapes follow the PyTorch __init__,
# weights stored pre-transposed (in, out) and pre-cast to bf16 for the MXU).
# ----------------------------------------------------------------------------

def init_params(key, d_model, nhead, num_layers, max_length, vocab_size,
                dim_ff=2048):
    def dense(k, shape, dtype=jnp.float32):
        return (jax.random.normal(k, shape, jnp.float32) * 0.02).astype(dtype)

    keys = iter(jax.random.split(key, 3 + num_layers * 6))
    params = {}
    params["embedding"] = dense(next(keys), (vocab_size, d_model))
    params["vocab_pred_w"] = dense(next(keys), (d_model, vocab_size), jnp.bfloat16)
    params["vocab_pred_b"] = dense(next(keys), (vocab_size,))

    # sinusoidal position table, exactly as in the module
    pos = jnp.arange(max_length, dtype=jnp.float32)[:, None]
    div = jnp.exp(jnp.arange(0, d_model, 2, dtype=jnp.float32) / d_model
                  * math.log(0.0001))
    pe = jnp.zeros((max_length, d_model), jnp.float32)
    pe = pe.at[:, 0::2].set(jnp.sin(pos * div))
    pe = pe.at[:, 1::2].set(jnp.cos(pos * div))
    params["position"] = pe[None]                                # (1, max_len, D)

    layers = []
    for _ in range(num_layers):
        p = {
            "self_attn": {
                "w_qkv": dense(next(keys), (d_model, 3 * d_model), jnp.bfloat16),
                "b_qkv": jnp.zeros((3 * d_model,), jnp.float32),
                "w_out": dense(next(keys), (d_model, d_model), jnp.bfloat16),
                "b_out": jnp.zeros((d_model,), jnp.float32),
            },
            "cross_attn": {
                "w_qkv": dense(next(keys), (d_model, 3 * d_model), jnp.bfloat16),
                "b_qkv": jnp.zeros((3 * d_model,), jnp.float32),
                "w_out": dense(next(keys), (d_model, d_model), jnp.bfloat16),
                "b_out": jnp.zeros((d_model,), jnp.float32),
            },
            "w1": dense(next(keys), (d_model, dim_ff), jnp.bfloat16),
            "b1": jnp.zeros((dim_ff,), jnp.float32),
            "w2": dense(next(keys), (dim_ff, d_model), jnp.bfloat16),
            "b2": jnp.zeros((d_model,), jnp.float32),
            "ln1_g": jnp.ones((d_model,), jnp.float32),
            "ln1_b": jnp.zeros((d_model,), jnp.float32),
            "ln2_g": jnp.ones((d_model,), jnp.float32),
            "ln2_b": jnp.zeros((d_model,), jnp.float32),
            "ln3_g": jnp.ones((d_model,), jnp.float32),
            "ln3_b": jnp.zeros((d_model,), jnp.float32),
        }
        layers.append(p)
    params["layers"] = layers
    return params


# ----------------------------------------------------------------------------

if __name__ == "__main__":
    d_model, nhead, num_layers = 32, 4, 2
    max_length, vocab_size = 16, 16
    B, Lt, Lm = 2, 8, 8

    key = jax.random.PRNGKey(0)
    k_param, k_seq, k_mem = jax.random.split(key, 3)

    params = init_params(k_param, d_model, nhead, num_layers, max_length,
                         vocab_size)

    seq = jax.random.randint(k_seq, (B, Lt), 0, vocab_size, dtype=jnp.int32)
    memory = jax.random.normal(k_mem, (Lm, B, d_model), jnp.float32)

    fwd = jax.jit(functools.partial(transformer_lm_forward, nhead=nhead))
    logits, hidden = fwd(seq, memory, params)
    jax.block_until_ready((logits, hidden))

    assert logits.shape == (B, Lt, vocab_size)
    assert hidden.shape == (B, Lt, d_model)
    assert bool(jnp.all(jnp.isfinite(logits))) and bool(jnp.all(jnp.isfinite(hidden)))
    print("KERNEL_OK")
</pallas_src>

<mosaic_0001>
module attributes {stable_mosaic.version = 11 : i64} {
  func.func @_linear_kernel(%arg0: i32, %arg1: i32, %arg2: i32, %arg3: memref<16x32xbf16, #tpu.memory_space<vmem>>, %arg4: memref<32x96xbf16, #tpu.memory_space<vmem>>, %arg5: memref<1x96xf32, #tpu.memory_space<vmem>>, %arg6: memref<16x96xbf16, #tpu.memory_space<vmem>>, %arg7: memref<16x96xf32, #tpu.memory_space<vmem>>) attributes {dimension_semantics = [#tpu.dimension_semantics<parallel>, #tpu.dimension_semantics<parallel>, #tpu.dimension_semantics<arbitrary>], iteration_bounds = array<i64: 1, 1, 1>, scalar_prefetch = 0 : i64, scratch_operands = 1 : i64, tpu.core_type = #tpu.core_type<tc>, window_params = [{transform_indices = @transform_0, window_bounds = array<i64: 16, 32>}, {transform_indices = @transform_1, window_bounds = array<i64: 32, 96>}, {transform_indices = @transform_2, window_bounds = array<i64: 1, 96>}, {transform_indices = @transform_3, window_bounds = array<i64: 16, 96>}]} {
    %c0_i32 = arith.constant 0 : i32
    %0 = arith.cmpi eq, %arg2, %c0_i32 : i32
    %1 = arith.extui %0 : i1 to i32
    %c0_i32_0 = arith.constant 0 : i32
    %2 = arith.cmpi ne, %1, %c0_i32_0 : i32
    scf.if %2 {
      %cst_10 = arith.constant 0.000000e+00 : f32
      %12 = vector.broadcast %cst_10 : f32 to vector<16x96xf32>
      %c0_11 = arith.constant 0 : index
      %c0_12 = arith.constant 0 : index
      %13 = vector.load %arg7[%c0_11, %c0_12] : memref<16x96xf32, #tpu.memory_space<vmem>>, vector<16x96xf32>
      tpu.vector_store %arg7[%c0_11, %c0_12], %12 {strides = array<i32>} : memref<16x96xf32, #tpu.memory_space<vmem>>, vector<16x96xf32>,
    } else {
    }
    %c0 = arith.constant 0 : index
    %c0_1 = arith.constant 0 : index
    %3 = vector.load %arg7[%c0, %c0_1] : memref<16x96xf32, #tpu.memory_space<vmem>>, vector<16x96xf32>
    %c0_2 = arith.constant 0 : index
    %c0_3 = arith.constant 0 : index
    %4 = vector.load %arg3[%c0_2, %c0_3] : memref<16x32xbf16, #tpu.memory_space<vmem>>, vector<16x32xbf16>
    %c0_4 = arith.constant 0 : index
    %c0_5 = arith.constant 0 : index
    %5 = vector.load %arg4[%c0_4, %c0_5] : memref<32x96xbf16, #tpu.memory_space<vmem>>, vector<32x96xbf16>
    %cst = arith.constant dense<0.000000e+00> : vector<16x96xf32>
    %6 = tpu.matmul %4, %5, %cst {dimension_numbers = #tpu.dot_dimension_numbers<[1], [0], [0], [1], [0, 0, 1, 1], [], []>} : vector<16x32xbf16>, vector<32x96xbf16>, vector<16x96xf32> -> vector<16x96xf32>
    %7 = arith.addf %3, %6 : vector<16x96xf32>
    %c0_6 = arith.constant 0 : index
    %c0_7 = arith.constant 0 : index
    %8 = vector.load %arg7[%c0_6, %c0_7] : memref<16x96xf32, #tpu.memory_space<vmem>>, vector<16x96xf32>
    tpu.vector_store %arg7[%c0_6, %c0_7], %7 {strides = array<i32>} : memref<16x96xf32, #tpu.memory_space<vmem>>, vector<16x96xf32>,
    %c0_i32_8 = arith.constant 0 : i32
    %9 = arith.cmpi eq, %arg2, %c0_i32_8 : i32
    %10 = arith.extui %9 : i1 to i32
    %c0_i32_9 = arith.constant 0 : i32
    %11 = arith.cmpi ne, %10, %c0_i32_9 : i32
    scf.if %11 {
      %c0_10 = arith.constant 0 : index
      %c0_11 = arith.constant 0 : index
      %12 = vector.load %arg7[%c0_10, %c0_11] : memref<16x96xf32, #tpu.memory_space<vmem>>, vector<16x96xf32>
      %c0_12 = arith.constant 0 : index
      %c0_13 = arith.constant 0 : index
      %13 = vector.load %arg5[%c0_12, %c0_13] : memref<1x96xf32, #tpu.memory_space<vmem>>, vector<1x96xf32>
      %14 = vector.broadcast %13 : vector<1x96xf32> to vector<16x96xf32>
      %15 = arith.addf %12, %14 : vector<16x96xf32>
      %16 = arith.truncf %15 : vector<16x96xf32> to vector<16x96xbf16>
      %c0_14 = arith.constant 0 : index
      %c0_15 = arith.constant 0 : index
      %17 = vector.load %arg6[%c0_14, %c0_15] : memref<16x96xbf16, #tpu.memory_space<vmem>>, vector<16x96xbf16>
      tpu.vector_store %arg6[%c0_14, %c0_15], %16 {strides = array<i32>} : memref<16x96xbf16, #tpu.memory_space<vmem>>, vector<16x96xbf16>,
    } else {
    }
    return
  }
  func.func @transform_0(%arg0: i32, %arg1: i32, %arg2: i32) -> (i32, i32) {
    %c0_i32 = arith.constant 0 : i32
    return %arg0, %arg2 : i32, i32
  }
  func.func @transform_1(%arg0: i32, %arg1: i32, %arg2: i32) -> (i32, i32) {
    %c0_i32 = arith.constant 0 : i32
    return %arg2, %arg1 : i32, i32
  }
  func.func @transform_2(%arg0: i32, %arg1: i32, %arg2: i32) -> (i32, i32) {
    %c0_i32 = arith.constant 0 : i32
    %c0_i32_0 = arith.constant 0 : i32
    return %c0_i32, %arg1 : i32, i32
  }
  func.func @transform_3(%arg0: i32, %arg1: i32, %arg2: i32) -> (i32, i32) {
    %c0_i32 = arith.constant 0 : i32
    return %arg0, %arg1 : i32, i32
  }
}

module attributes {stable_mosaic.version = 11 : i64} {
  func.func @_attn_kernel(%arg0: i32, %arg1: memref<1x4x8x8xbf16, #tpu.memory_space<vmem>>, %arg2: memref<1x4x8x8xbf16, #tpu.memory_space<vmem>>, %arg3: memref<1x4x8x8xbf16, #tpu.memory_space<vmem>>, %arg4: memref<1x4x8x8xbf16, #tpu.memory_space<vmem>>) attributes {dimension_semantics = [#tpu.dimension_semantics<parallel>], iteration_bounds = array<i64: 2>, scalar_prefetch = 0 : i64, scratch_operands = 0 : i64, tpu.core_type = #tpu.core_type<tc>, window_params = [{transform_indices = @transform_0, window_bounds = array<i64: 1, 4, 8, 8>}, {transform_indices = @transform_1, window_bounds = array<i64: 1, 4, 8, 8>}, {transform_indices = @transform_2, window_bounds = array<i64: 1, 4, 8, 8>}, {transform_indices = @transform_3, window_bounds = array<i64: 1, 4, 8, 8>}]} {
    %c0 = arith.constant 0 : index
    %c0_0 = arith.constant 0 : index
    %c0_1 = arith.constant 0 : index
    %c0_2 = arith.constant 0 : index
    %0 = vector.load %arg1[%c0, %c0_0, %c0_1, %c0_2] : memref<1x4x8x8xbf16, #tpu.memory_space<vmem>>, vector<1x4x8x8xbf16>
    %1 = vector.shape_cast %0 : vector<1x4x8x8xbf16> to vector<4x8x8xbf16>
    %c0_3 = arith.constant 0 : index
    %c0_4 = arith.constant 0 : index
    %c0_5 = arith.constant 0 : index
    %c0_6 = arith.constant 0 : index
    %2 = vector.load %arg2[%c0_3, %c0_4, %c0_5, %c0_6] : memref<1x4x8x8xbf16, #tpu.memory_space<vmem>>, vector<1x4x8x8xbf16>
    %3 = vector.shape_cast %2 : vector<1x4x8x8xbf16> to vector<4x8x8xbf16>
    %c0_7 = arith.constant 0 : index
    %c0_8 = arith.constant 0 : index
    %c0_9 = arith.constant 0 : index
    %c0_10 = arith.constant 0 : index
    %4 = vector.load %arg3[%c0_7, %c0_8, %c0_9, %c0_10] : memref<1x4x8x8xbf16, #tpu.memory_space<vmem>>, vector<1x4x8x8xbf16>
    %5 = vector.shape_cast %4 : vector<1x4x8x8xbf16> to vector<4x8x8xbf16>
    "tpu.trace_start"() <{level = 10 : i32, message = "hqd,hkd->hqk"}> : () -> ()
    %cst = arith.constant dense<0.000000e+00> : vector<4x8x8xf32>
    %6 = tpu.matmul %1, %3, %cst {dimension_numbers = #tpu.dot_dimension_numbers<[2], [2], [1], [1], [0, 0, 0, 1, 1, 1], [0], [0]>} : vector<4x8x8xbf16>, vector<4x8x8xbf16>, vector<4x8x8xf32> -> vector<4x8x8xf32>
    "tpu.trace_stop"() : () -> ()
    %cst_11 = arith.constant 0.353553385 : f32
    %7 = vector.broadcast %cst_11 : f32 to vector<4x8x8xf32>
    %8 = arith.mulf %6, %7 : vector<4x8x8xf32>
    %9 = tpu.iota {dimensions = array<i32: 0>} : vector<8x8xi32>
    %10 = tpu.iota {dimensions = array<i32: 1>} : vector<8x8xi32>
    %11 = arith.cmpi sle, %10, %9 : vector<8x8xi32>
    %cst_12 = arith.constant -1.000000e+30 : f32
    %12 = vector.shape_cast %11 : vector<8x8xi1> to vector<1x8x8xi1>
    %13 = vector.broadcast %12 : vector<1x8x8xi1> to vector<4x8x8xi1>
    %14 = vector.broadcast %cst_12 : f32 to vector<4x8x8xf32>
    %15 = arith.select %13, %8, %14 : vector<4x8x8xi1>, vector<4x8x8xf32>
    %cst_13 = arith.constant dense<0xFF800000> : vector<4x8xf32>
    %16 = vector.multi_reduction <maximumf>, %15, %cst_13 [2] : vector<4x8x8xf32> to vector<4x8xf32>
    %17 = vector.shape_cast %16 : vector<4x8xf32> to vector<4x8x1xf32>
    %18 = vector.broadcast %17 : vector<4x8x1xf32> to vector<4x8x8xf32>
    %19 = arith.subf %15, %18 : vector<4x8x8xf32>
    %20 = math.exp %19 : vector<4x8x8xf32>
    %cst_14 = arith.constant dense<0.000000e+00> : vector<4x8xf32>
    %21 = vector.multi_reduction <add>, %20, %cst_14 [2] : vector<4x8x8xf32> to vector<4x8xf32>
    %22 = vector.shape_cast %21 : vector<4x8xf32> to vector<4x8x1xf32>
    %23 = tpu.reciprocal %22 {approx = true} : vector<4x8x1xf32> -> vector<4x8x1xf32>
    %24 = vector.broadcast %23 : vector<4x8x1xf32> to vector<4x8x8xf32>
    %25 = arith.mulf %20, %24 : vector<4x8x8xf32>
    %26 = arith.truncf %25 : vector<4x8x8xf32> to vector<4x8x8xbf16>
    "tpu.trace_start"() <{level = 10 : i32, message = "hqk,hkd->hqd"}> : () -> ()
    %cst_15 = arith.constant dense<0.000000e+00> : vector<4x8x8xf32>
    %27 = tpu.matmul %26, %5, %cst_15 {dimension_numbers = #tpu.dot_dimension_numbers<[2], [1], [1], [2], [0, 0, 0, 1, 1, 2], [0], [0]>} : vector<4x8x8xbf16>, vector<4x8x8xbf16>, vector<4x8x8xf32> -> vector<4x8x8xf32>
    "tpu.trace_stop"() : () -> ()
    %28 = arith.truncf %27 : vector<4x8x8xf32> to vector<4x8x8xbf16>
    %c0_16 = arith.constant 0 : index
    %c0_17 = arith.constant 0 : index
    %c0_18 = arith.constant 0 : index
    %c0_19 = arith.constant 0 : index
    %29 = vector.load %arg4[%c0_16, %c0_17, %c0_18, %c0_19] : memref<1x4x8x8xbf16, #tpu.memory_space<vmem>>, vector<1x4x8x8xbf16>
    %30 = vector.shape_cast %29 : vector<1x4x8x8xbf16> to vector<4x8x8xbf16>
    %31 = vector.shape_cast %28 : vector<4x8x8xbf16> to vector<1x4x8x8xbf16>
    tpu.vector_store %arg4[%c0_16, %c0_17, %c0_18, %c0_19], %31 {strides = array<i32>} : memref<1x4x8x8xbf16, #tpu.memory_space<vmem>>, vector<1x4x8x8xbf16>,
    return
  }
  func.func @transform_0(%arg0: i32) -> (i32, i32, i32, i32) {
    %c0_i32 = arith.constant 0 : i32
    %c0_i32_0 = arith.constant 0 : i32
    %c0_i32_1 = arith.constant 0 : i32
    %c0_i32_2 = arith.constant 0 : i32
    return %arg0, %c0_i32, %c0_i32_0, %c0_i32_1 : i32, i32, i32, i32
  }
  func.func @transform_1(%arg0: i32) -> (i32, i32, i32, i32) {
    %c0_i32 = arith.constant 0 : i32
    %c0_i32_0 = arith.constant 0 : i32
    %c0_i32_1 = arith.constant 0 : i32
    %c0_i32_2 = arith.constant 0 : i32
    return %arg0, %c0_i32, %c0_i32_0, %c0_i32_1 : i32, i32, i32, i32
  }
  func.func @transform_2(%arg0: i32) -> (i32, i32, i32, i32) {
    %c0_i32 = arith.constant 0 : i32
    %c0_i32_0 = arith.constant 0 : i32
    %c0_i32_1 = arith.constant 0 : i32
    %c0_i32_2 = arith.constant 0 : i32
    return %arg0, %c0_i32, %c0_i32_0, %c0_i32_1 : i32, i32, i32, i32
  }
  func.func @transform_3(%arg0: i32) -> (i32, i32, i32, i32) {
    %c0_i32 = arith.constant 0 : i32
    %c0_i32_0 = arith.constant 0 : i32
    %c0_i32_1 = arith.constant 0 : i32
    %c0_i32_2 = arith.constant 0 : i32
    return %arg0, %c0_i32, %c0_i32_0, %c0_i32_1 : i32, i32, i32, i32
  }
}

module attributes {stable_mosaic.version = 11 : i64} {
  func.func @_linear_kernel(%arg0: i32, %arg1: i32, %arg2: i32, %arg3: memref<16x32xbf16, #tpu.memory_space<vmem>>, %arg4: memref<32x32xbf16, #tpu.memory_space<vmem>>, %arg5: memref<1x32xf32, #tpu.memory_space<vmem>>, %arg6: memref<16x32xf32, #tpu.memory_space<vmem>>, %arg7: memref<16x32xf32, #tpu.memory_space<vmem>>) attributes {dimension_semantics = [#tpu.dimension_semantics<parallel>, #tpu.dimension_semantics<parallel>, #tpu.dimension_semantics<arbitrary>], iteration_bounds = array<i64: 1, 1, 1>, scalar_prefetch = 0 : i64, scratch_operands = 1 : i64, tpu.core_type = #tpu.core_type<tc>, window_params = [{transform_indices = @transform_0, window_bounds = array<i64: 16, 32>}, {transform_indices = @transform_1, window_bounds = array<i64: 32, 32>}, {transform_indices = @transform_2, window_bounds = array<i64: 1, 32>}, {transform_indices = @transform_3, window_bounds = array<i64: 16, 32>}]} {
    %c0_i32 = arith.constant 0 : i32
    %0 = arith.cmpi eq, %arg2, %c0_i32 : i32
    %1 = arith.extui %0 : i1 to i32
    %c0_i32_0 = arith.constant 0 : i32
    %2 = arith.cmpi ne, %1, %c0_i32_0 : i32
    scf.if %2 {
      %cst_10 = arith.constant 0.000000e+00 : f32
      %12 = vector.broadcast %cst_10 : f32 to vector<16x32xf32>
      %c0_11 = arith.constant 0 : index
      %c0_12 = arith.constant 0 : index
      %13 = vector.load %arg7[%c0_11, %c0_12] : memref<16x32xf32, #tpu.memory_space<vmem>>, vector<16x32xf32>
      tpu.vector_store %arg7[%c0_11, %c0_12], %12 {strides = array<i32>} : memref<16x32xf32, #tpu.memory_space<vmem>>, vector<16x32xf32>,
    } else {
    }
    %c0 = arith.constant 0 : index
    %c0_1 = arith.constant 0 : index
    %3 = vector.load %arg7[%c0, %c0_1] : memref<16x32xf32, #tpu.memory_space<vmem>>, vector<16x32xf32>
    %c0_2 = arith.constant 0 : index
    %c0_3 = arith.constant 0 : index
    %4 = vector.load %arg3[%c0_2, %c0_3] : memref<16x32xbf16, #tpu.memory_space<vmem>>, vector<16x32xbf16>
    %c0_4 = arith.constant 0 : index
    %c0_5 = arith.constant 0 : index
    %5 = vector.load %arg4[%c0_4, %c0_5] : memref<32x32xbf16, #tpu.memory_space<vmem>>, vector<32x32xbf16>
    %cst = arith.constant dense<0.000000e+00> : vector<16x32xf32>
    %6 = tpu.matmul %4, %5, %cst {dimension_numbers = #tpu.dot_dimension_numbers<[1], [0], [0], [1], [0, 0, 1, 1], [], []>} : vector<16x32xbf16>, vector<32x32xbf16>, vector<16x32xf32> -> vector<16x32xf32>
    %7 = arith.addf %3, %6 : vector<16x32xf32>
    %c0_6 = arith.constant 0 : index
    %c0_7 = arith.constant 0 : index
    %8 = vector.load %arg7[%c0_6, %c0_7] : memref<16x32xf32, #tpu.memory_space<vmem>>, vector<16x32xf32>
    tpu.vector_store %arg7[%c0_6, %c0_7], %7 {strides = array<i32>} : memref<16x32xf32, #tpu.memory_space<vmem>>, vector<16x32xf32>,
    %c0_i32_8 = arith.constant 0 : i32
    %9 = arith.cmpi eq, %arg2, %c0_i32_8 : i32
    %10 = arith.extui %9 : i1 to i32
    %c0_i32_9 = arith.constant 0 : i32
    %11 = arith.cmpi ne, %10, %c0_i32_9 : i32
    scf.if %11 {
      %c0_10 = arith.constant 0 : index
      %c0_11 = arith.constant 0 : index
      %12 = vector.load %arg7[%c0_10, %c0_11] : memref<16x32xf32, #tpu.memory_space<vmem>>, vector<16x32xf32>
      %c0_12 = arith.constant 0 : index
      %c0_13 = arith.constant 0 : index
      %13 = vector.load %arg5[%c0_12, %c0_13] : memref<1x32xf32, #tpu.memory_space<vmem>>, vector<1x32xf32>
      %14 = vector.broadcast %13 : vector<1x32xf32> to vector<16x32xf32>
      %15 = arith.addf %12, %14 : vector<16x32xf32>
      %c0_14 = arith.constant 0 : index
      %c0_15 = arith.constant 0 : index
      %16 = vector.load %arg6[%c0_14, %c0_15] : memref<16x32xf32, #tpu.memory_space<vmem>>, vector<16x32xf32>
      tpu.vector_store %arg6[%c0_14, %c0_15], %15 {strides = array<i32>} : memref<16x32xf32, #tpu.memory_space<vmem>>, vector<16x32xf32>,
    } else {
    }
    return
  }
  func.func @transform_0(%arg0: i32, %arg1: i32, %arg2: i32) -> (i32, i32) {
    %c0_i32 = arith.constant 0 : i32
    return %arg0, %arg2 : i32, i32
  }
  func.func @transform_1(%arg0: i32, %arg1: i32, %arg2: i32) -> (i32, i32) {
    %c0_i32 = arith.constant 0 : i32
    return %arg2, %arg1 : i32, i32
  }
  func.func @transform_2(%arg0: i32, %arg1: i32, %arg2: i32) -> (i32, i32) {
    %c0_i32 = arith.constant 0 : i32
    %c0_i32_0 = arith.constant 0 : i32
    return %c0_i32, %arg1 : i32, i32
  }
  func.func @transform_3(%arg0: i32, %arg1: i32, %arg2: i32) -> (i32, i32) {
    %c0_i32 = arith.constant 0 : i32
    return %arg0, %arg1 : i32, i32
  }
}

module attributes {stable_mosaic.version = 11 : i64} {
  func.func @_add_ln_kernel(%arg0: i32, %arg1: memref<16x32xf32, #tpu.memory_space<vmem>>, %arg2: memref<16x32xf32, #tpu.memory_space<vmem>>, %arg3: memref<1x32xf32, #tpu.memory_space<vmem>>, %arg4: memref<1x32xf32, #tpu.memory_space<vmem>>, %arg5: memref<16x32xf32, #tpu.memory_space<vmem>>) attributes {dimension_semantics = [#tpu.dimension_semantics<parallel>], iteration_bounds = array<i64: 1>, scalar_prefetch = 0 : i64, scratch_operands = 0 : i64, tpu.core_type = #tpu.core_type<tc>, window_params = [{transform_indices = @transform_0, window_bounds = array<i64: 16, 32>}, {transform_indices = @transform_1, window_bounds = array<i64: 16, 32>}, {pipeline_mode = #tpu.pipeline_mode<synchronous>, transform_indices = @transform_2, window_bounds = array<i64: 1, 32>}, {pipeline_mode = #tpu.pipeline_mode<synchronous>, transform_indices = @transform_3, window_bounds = array<i64: 1, 32>}, {transform_indices = @transform_4, window_bounds = array<i64: 16, 32>}]} {
    %c0 = arith.constant 0 : index
    %c0_0 = arith.constant 0 : index
    %0 = vector.load %arg1[%c0, %c0_0] : memref<16x32xf32, #tpu.memory_space<vmem>>, vector<16x32xf32>
    %c0_1 = arith.constant 0 : index
    %c0_2 = arith.constant 0 : index
    %1 = vector.load %arg2[%c0_1, %c0_2] : memref<16x32xf32, #tpu.memory_space<vmem>>, vector<16x32xf32>
    %2 = arith.addf %0, %1 : vector<16x32xf32>
    %cst = arith.constant dense<0.000000e+00> : vector<16xf32>
    %3 = vector.multi_reduction <add>, %2, %cst [1] : vector<16x32xf32> to vector<16xf32>
    %4 = vector.shape_cast %3 : vector<16xf32> to vector<16x1xf32>
    %cst_3 = arith.constant 3.200000e+01 : f32
    %5 = vector.broadcast %cst_3 : f32 to vector<16x1xf32>
    %6 = arith.divf %4, %5 : vector<16x1xf32>
    %7 = vector.broadcast %6 : vector<16x1xf32> to vector<16x32xf32>
    %8 = arith.subf %2, %7 : vector<16x32xf32>
    %9 = arith.mulf %8, %8 : vector<16x32xf32>
    %cst_4 = arith.constant dense<0.000000e+00> : vector<16xf32>
    %10 = vector.multi_reduction <add>, %9, %cst_4 [1] : vector<16x32xf32> to vector<16xf32>
    %11 = vector.shape_cast %10 : vector<16xf32> to vector<16x1xf32>
    %cst_5 = arith.constant 3.200000e+01 : f32
    %12 = vector.broadcast %cst_5 : f32 to vector<16x1xf32>
    %13 = arith.divf %11, %12 : vector<16x1xf32>
    %14 = vector.broadcast %6 : vector<16x1xf32> to vector<16x32xf32>
    %15 = arith.subf %2, %14 : vector<16x32xf32>
    %cst_6 = arith.constant 9.99999974E-6 : f32
    %16 = vector.broadcast %cst_6 : f32 to vector<16x1xf32>
    %17 = arith.addf %13, %16 : vector<16x1xf32>
    %18 = math.rsqrt %17 : vector<16x1xf32>
    %19 = vector.broadcast %18 : vector<16x1xf32> to vector<16x32xf32>
    %20 = arith.mulf %15, %19 : vector<16x32xf32>
    %c0_7 = arith.constant 0 : index
    %c0_8 = arith.constant 0 : index
    %21 = vector.load %arg3[%c0_7, %c0_8] : memref<1x32xf32, #tpu.memory_space<vmem>>, vector<1x32xf32>
    %22 = vector.broadcast %21 : vector<1x32xf32> to vector<16x32xf32>
    %23 = arith.mulf %20, %22 : vector<16x32xf32>
    %c0_9 = arith.constant 0 : index
    %c0_10 = arith.constant 0 : index
    %24 = vector.load %arg4[%c0_9, %c0_10] : memref<1x32xf32, #tpu.memory_space<vmem>>, vector<1x32xf32>
    %25 = vector.broadcast %24 : vector<1x32xf32> to vector<16x32xf32>
    %26 = arith.addf %23, %25 : vector<16x32xf32>
    %c0_11 = arith.constant 0 : index
    %c0_12 = arith.constant 0 : index
    %27 = vector.load %arg5[%c0_11, %c0_12] : memref<16x32xf32, #tpu.memory_space<vmem>>, vector<16x32xf32>
    tpu.vector_store %arg5[%c0_11, %c0_12], %26 {strides = array<i32>} : memref<16x32xf32, #tpu.memory_space<vmem>>, vector<16x32xf32>,
    return
  }
  func.func @transform_0(%arg0: i32) -> (i32, i32) {
    %c0_i32 = arith.constant 0 : i32
    %c0_i32_0 = arith.constant 0 : i32
    return %arg0, %c0_i32 : i32, i32
  }
  func.func @transform_1(%arg0: i32) -> (i32, i32) {
    %c0_i32 = arith.constant 0 : i32
    %c0_i32_0 = arith.constant 0 : i32
    return %arg0, %c0_i32 : i32, i32
  }
  func.func @transform_2(%arg0: i32) -> (i32, i32) {
    %c0_i32 = arith.constant 0 : i32
    %c0_i32_0 = arith.constant 0 : i32
    %c0_i32_1 = arith.constant 0 : i32
    return %c0_i32, %c0_i32_0 : i32, i32
  }
  func.func @transform_3(%arg0: i32) -> (i32, i32) {
    %c0_i32 = arith.constant 0 : i32
    %c0_i32_0 = arith.constant 0 : i32
    %c0_i32_1 = arith.constant 0 : i32
    return %c0_i32, %c0_i32_0 : i32, i32
  }
  func.func @transform_4(%arg0: i32) -> (i32, i32) {
    %c0_i32 = arith.constant 0 : i32
    %c0_i32_0 = arith.constant 0 : i32
    return %arg0, %c0_i32 : i32, i32
  }
}

module attributes {stable_mosaic.version = 11 : i64} {
  func.func @_linear_kernel(%arg0: i32, %arg1: i32, %arg2: i32, %arg3: memref<16x32xbf16, #tpu.memory_space<vmem>>, %arg4: memref<32x32xbf16, #tpu.memory_space<vmem>>, %arg5: memref<1x32xf32, #tpu.memory_space<vmem>>, %arg6: memref<16x32xbf16, #tpu.memory_space<vmem>>, %arg7: memref<16x32xf32, #tpu.memory_space<vmem>>) attributes {dimension_semantics = [#tpu.dimension_semantics<parallel>, #tpu.dimension_semantics<parallel>, #tpu.dimension_semantics<arbitrary>], iteration_bounds = array<i64: 1, 1, 1>, scalar_prefetch = 0 : i64, scratch_operands = 1 : i64, tpu.core_type = #tpu.core_type<tc>, window_params = [{transform_indices = @transform_0, window_bounds = array<i64: 16, 32>}, {transform_indices = @transform_1, window_bounds = array<i64: 32, 32>}, {transform_indices = @transform_2, window_bounds = array<i64: 1, 32>}, {transform_indices = @transform_3, window_bounds = array<i64: 16, 32>}]} {
    %c0_i32 = arith.constant 0 : i32
    %0 = arith.cmpi eq, %arg2, %c0_i32 : i32
    %1 = arith.extui %0 : i1 to i32
    %c0_i32_0 = arith.constant 0 : i32
    %2 = arith.cmpi ne, %1, %c0_i32_0 : i32
    scf.if %2 {
      %cst_10 = arith.constant 0.000000e+00 : f32
      %12 = vector.broadcast %cst_10 : f32 to vector<16x32xf32>
      %c0_11 = arith.constant 0 : index
      %c0_12 = arith.constant 0 : index
      %13 = vector.load %arg7[%c0_11, %c0_12] : memref<16x32xf32, #tpu.memory_space<vmem>>, vector<16x32xf32>
      tpu.vector_store %arg7[%c0_11, %c0_12], %12 {strides = array<i32>} : memref<16x32xf32, #tpu.memory_space<vmem>>, vector<16x32xf32>,
    } else {
    }
    %c0 = arith.constant 0 : index
    %c0_1 = arith.constant 0 : index
    %3 = vector.load %arg7[%c0, %c0_1] : memref<16x32xf32, #tpu.memory_space<vmem>>, vector<16x32xf32>
    %c0_2 = arith.constant 0 : index
    %c0_3 = arith.constant 0 : index
    %4 = vector.load %arg3[%c0_2, %c0_3] : memref<16x32xbf16, #tpu.memory_space<vmem>>, vector<16x32xbf16>
    %c0_4 = arith.constant 0 : index
    %c0_5 = arith.constant 0 : index
    %5 = vector.load %arg4[%c0_4, %c0_5] : memref<32x32xbf16, #tpu.memory_space<vmem>>, vector<32x32xbf16>
    %cst = arith.constant dense<0.000000e+00> : vector<16x32xf32>
    %6 = tpu.matmul %4, %5, %cst {dimension_numbers = #tpu.dot_dimension_numbers<[1], [0], [0], [1], [0, 0, 1, 1], [], []>} : vector<16x32xbf16>, vector<32x32xbf16>, vector<16x32xf32> -> vector<16x32xf32>
    %7 = arith.addf %3, %6 : vector<16x32xf32>
    %c0_6 = arith.constant 0 : index
    %c0_7 = arith.constant 0 : index
    %8 = vector.load %arg7[%c0_6, %c0_7] : memref<16x32xf32, #tpu.memory_space<vmem>>, vector<16x32xf32>
    tpu.vector_store %arg7[%c0_6, %c0_7], %7 {strides = array<i32>} : memref<16x32xf32, #tpu.memory_space<vmem>>, vector<16x32xf32>,
    %c0_i32_8 = arith.constant 0 : i32
    %9 = arith.cmpi eq, %arg2, %c0_i32_8 : i32
    %10 = arith.extui %9 : i1 to i32
    %c0_i32_9 = arith.constant 0 : i32
    %11 = arith.cmpi ne, %10, %c0_i32_9 : i32
    scf.if %11 {
      %c0_10 = arith.constant 0 : index
      %c0_11 = arith.constant 0 : index
      %12 = vector.load %arg7[%c0_10, %c0_11] : memref<16x32xf32, #tpu.memory_space<vmem>>, vector<16x32xf32>
      %c0_12 = arith.constant 0 : index
      %c0_13 = arith.constant 0 : index
      %13 = vector.load %arg5[%c0_12, %c0_13] : memref<1x32xf32, #tpu.memory_space<vmem>>, vector<1x32xf32>
      %14 = vector.broadcast %13 : vector<1x32xf32> to vector<16x32xf32>
      %15 = arith.addf %12, %14 : vector<16x32xf32>
      %16 = arith.truncf %15 : vector<16x32xf32> to vector<16x32xbf16>
      %c0_14 = arith.constant 0 : index
      %c0_15 = arith.constant 0 : index
      %17 = vector.load %arg6[%c0_14, %c0_15] : memref<16x32xbf16, #tpu.memory_space<vmem>>, vector<16x32xbf16>
      tpu.vector_store %arg6[%c0_14, %c0_15], %16 {strides = array<i32>} : memref<16x32xbf16, #tpu.memory_space<vmem>>, vector<16x32xbf16>,
    } else {
    }
    return
  }
  func.func @transform_0(%arg0: i32, %arg1: i32, %arg2: i32) -> (i32, i32) {
    %c0_i32 = arith.constant 0 : i32
    return %arg0, %arg2 : i32, i32
  }
  func.func @transform_1(%arg0: i32, %arg1: i32, %arg2: i32) -> (i32, i32) {
    %c0_i32 = arith.constant 0 : i32
    return %arg2, %arg1 : i32, i32
  }
  func.func @transform_2(%arg0: i32, %arg1: i32, %arg2: i32) -> (i32, i32) {
    %c0_i32 = arith.constant 0 : i32
    %c0_i32_0 = arith.constant 0 : i32
    return %c0_i32, %arg1 : i32, i32
  }
  func.func @transform_3(%arg0: i32, %arg1: i32, %arg2: i32) -> (i32, i32) {
    %c0_i32 = arith.constant 0 : i32
    return %arg0, %arg1 : i32, i32
  }
}

module attributes {stable_mosaic.version = 11 : i64} {
  func.func @_attn_kernel(%arg0: i32, %arg1: memref<1x4x8x8xbf16, #tpu.memory_space<vmem>>, %arg2: memref<1x4x8x8xbf16, #tpu.memory_space<vmem>>, %arg3: memref<1x4x8x8xbf16, #tpu.memory_space<vmem>>, %arg4: memref<1x4x8x8xbf16, #tpu.memory_space<vmem>>) attributes {dimension_semantics = [#tpu.dimension_semantics<parallel>], iteration_bounds = array<i64: 2>, scalar_prefetch = 0 : i64, scratch_operands = 0 : i64, tpu.core_type = #tpu.core_type<tc>, window_params = [{transform_indices = @transform_0, window_bounds = array<i64: 1, 4, 8, 8>}, {transform_indices = @transform_1, window_bounds = array<i64: 1, 4, 8, 8>}, {transform_indices = @transform_2, window_bounds = array<i64: 1, 4, 8, 8>}, {transform_indices = @transform_3, window_bounds = array<i64: 1, 4, 8, 8>}]} {
    %c0 = arith.constant 0 : index
    %c0_0 = arith.constant 0 : index
    %c0_1 = arith.constant 0 : index
    %c0_2 = arith.constant 0 : index
    %0 = vector.load %arg1[%c0, %c0_0, %c0_1, %c0_2] : memref<1x4x8x8xbf16, #tpu.memory_space<vmem>>, vector<1x4x8x8xbf16>
    %1 = vector.shape_cast %0 : vector<1x4x8x8xbf16> to vector<4x8x8xbf16>
    %c0_3 = arith.constant 0 : index
    %c0_4 = arith.constant 0 : index
    %c0_5 = arith.constant 0 : index
    %c0_6 = arith.constant 0 : index
    %2 = vector.load %arg2[%c0_3, %c0_4, %c0_5, %c0_6] : memref<1x4x8x8xbf16, #tpu.memory_space<vmem>>, vector<1x4x8x8xbf16>
    %3 = vector.shape_cast %2 : vector<1x4x8x8xbf16> to vector<4x8x8xbf16>
    %c0_7 = arith.constant 0 : index
    %c0_8 = arith.constant 0 : index
    %c0_9 = arith.constant 0 : index
    %c0_10 = arith.constant 0 : index
    %4 = vector.load %arg3[%c0_7, %c0_8, %c0_9, %c0_10] : memref<1x4x8x8xbf16, #tpu.memory_space<vmem>>, vector<1x4x8x8xbf16>
    %5 = vector.shape_cast %4 : vector<1x4x8x8xbf16> to vector<4x8x8xbf16>
    "tpu.trace_start"() <{level = 10 : i32, message = "hqd,hkd->hqk"}> : () -> ()
    %cst = arith.constant dense<0.000000e+00> : vector<4x8x8xf32>
    %6 = tpu.matmul %1, %3, %cst {dimension_numbers = #tpu.dot_dimension_numbers<[2], [2], [1], [1], [0, 0, 0, 1, 1, 1], [0], [0]>} : vector<4x8x8xbf16>, vector<4x8x8xbf16>, vector<4x8x8xf32> -> vector<4x8x8xf32>
    "tpu.trace_stop"() : () -> ()
    %cst_11 = arith.constant 0.353553385 : f32
    %7 = vector.broadcast %cst_11 : f32 to vector<4x8x8xf32>
    %8 = arith.mulf %6, %7 : vector<4x8x8xf32>
    %cst_12 = arith.constant dense<0xFF800000> : vector<4x8xf32>
    %9 = vector.multi_reduction <maximumf>, %8, %cst_12 [2] : vector<4x8x8xf32> to vector<4x8xf32>
    %10 = vector.shape_cast %9 : vector<4x8xf32> to vector<4x8x1xf32>
    %11 = vector.broadcast %10 : vector<4x8x1xf32> to vector<4x8x8xf32>
    %12 = arith.subf %8, %11 : vector<4x8x8xf32>
    %13 = math.exp %12 : vector<4x8x8xf32>
    %cst_13 = arith.constant dense<0.000000e+00> : vector<4x8xf32>
    %14 = vector.multi_reduction <add>, %13, %cst_13 [2] : vector<4x8x8xf32> to vector<4x8xf32>
    %15 = vector.shape_cast %14 : vector<4x8xf32> to vector<4x8x1xf32>
    %16 = tpu.reciprocal %15 {approx = true} : vector<4x8x1xf32> -> vector<4x8x1xf32>
    %17 = vector.broadcast %16 : vector<4x8x1xf32> to vector<4x8x8xf32>
    %18 = arith.mulf %13, %17 : vector<4x8x8xf32>
    %19 = arith.truncf %18 : vector<4x8x8xf32> to vector<4x8x8xbf16>
    "tpu.trace_start"() <{level = 10 : i32, message = "hqk,hkd->hqd"}> : () -> ()
    %cst_14 = arith.constant dense<0.000000e+00> : vector<4x8x8xf32>
    %20 = tpu.matmul %19, %5, %cst_14 {dimension_numbers = #tpu.dot_dimension_numbers<[2], [1], [1], [2], [0, 0, 0, 1, 1, 2], [0], [0]>} : vector<4x8x8xbf16>, vector<4x8x8xbf16>, vector<4x8x8xf32> -> vector<4x8x8xf32>
    "tpu.trace_stop"() : () -> ()
    %21 = arith.truncf %20 : vector<4x8x8xf32> to vector<4x8x8xbf16>
    %c0_15 = arith.constant 0 : index
    %c0_16 = arith.constant 0 : index
    %c0_17 = arith.constant 0 : index
    %c0_18 = arith.constant 0 : index
    %22 = vector.load %arg4[%c0_15, %c0_16, %c0_17, %c0_18] : memref<1x4x8x8xbf16, #tpu.memory_space<vmem>>, vector<1x4x8x8xbf16>
    %23 = vector.shape_cast %22 : vector<1x4x8x8xbf16> to vector<4x8x8xbf16>
    %24 = vector.shape_cast %21 : vector<4x8x8xbf16> to vector<1x4x8x8xbf16>
    tpu.vector_store %arg4[%c0_15, %c0_16, %c0_17, %c0_18], %24 {strides = array<i32>} : memref<1x4x8x8xbf16, #tpu.memory_space<vmem>>, vector<1x4x8x8xbf16>,
    return
  }
  func.func @transform_0(%arg0: i32) -> (i32, i32, i32, i32) {
    %c0_i32 = arith.constant 0 : i32
    %c0_i32_0 = arith.constant 0 : i32
    %c0_i32_1 = arith.constant 0 : i32
    %c0_i32_2 = arith.constant 0 : i32
    return %arg0, %c0_i32, %c0_i32_0, %c0_i32_1 : i32, i32, i32, i32
  }
  func.func @transform_1(%arg0: i32) -> (i32, i32, i32, i32) {
    %c0_i32 = arith.constant 0 : i32
    %c0_i32_0 = arith.constant 0 : i32
    %c0_i32_1 = arith.constant 0 : i32
    %c0_i32_2 = arith.constant 0 : i32
    return %arg0, %c0_i32, %c0_i32_0, %c0_i32_1 : i32, i32, i32, i32
  }
  func.func @transform_2(%arg0: i32) -> (i32, i32, i32, i32) {
    %c0_i32 = arith.constant 0 : i32
    %c0_i32_0 = arith.constant 0 : i32
    %c0_i32_1 = arith.constant 0 : i32
    %c0_i32_2 = arith.constant 0 : i32
    return %arg0, %c0_i32, %c0_i32_0, %c0_i32_1 : i32, i32, i32, i32
  }
  func.func @transform_3(%arg0: i32) -> (i32, i32, i32, i32) {
    %c0_i32 = arith.constant 0 : i32
    %c0_i32_0 = arith.constant 0 : i32
    %c0_i32_1 = arith.constant 0 : i32
    %c0_i32_2 = arith.constant 0 : i32
    return %arg0, %c0_i32, %c0_i32_0, %c0_i32_1 : i32, i32, i32, i32
  }
}

module attributes {stable_mosaic.version = 11 : i64} {
  func.func @_linear_kernel(%arg0: i32, %arg1: i32, %arg2: i32, %arg3: memref<16x32xbf16, #tpu.memory_space<vmem>>, %arg4: memref<32x512xbf16, #tpu.memory_space<vmem>>, %arg5: memref<1x512xf32, #tpu.memory_space<vmem>>, %arg6: memref<16x512xbf16, #tpu.memory_space<vmem>>, %arg7: memref<16x512xf32, #tpu.memory_space<vmem>>) attributes {dimension_semantics = [#tpu.dimension_semantics<parallel>, #tpu.dimension_semantics<parallel>, #tpu.dimension_semantics<arbitrary>], iteration_bounds = array<i64: 1, 4, 1>, scalar_prefetch = 0 : i64, scratch_operands = 1 : i64, tpu.core_type = #tpu.core_type<tc>, window_params = [{transform_indices = @transform_0, window_bounds = array<i64: 16, 32>}, {transform_indices = @transform_1, window_bounds = array<i64: 32, 512>}, {transform_indices = @transform_2, window_bounds = array<i64: 1, 512>}, {transform_indices = @transform_3, window_bounds = array<i64: 16, 512>}]} {
    %c0_i32 = arith.constant 0 : i32
    %0 = arith.cmpi eq, %arg2, %c0_i32 : i32
    %1 = arith.extui %0 : i1 to i32
    %c0_i32_0 = arith.constant 0 : i32
    %2 = arith.cmpi ne, %1, %c0_i32_0 : i32
    scf.if %2 {
      %cst_10 = arith.constant 0.000000e+00 : f32
      %12 = vector.broadcast %cst_10 : f32 to vector<16x512xf32>
      %c0_11 = arith.constant 0 : index
      %c0_12 = arith.constant 0 : index
      %13 = vector.load %arg7[%c0_11, %c0_12] : memref<16x512xf32, #tpu.memory_space<vmem>>, vector<16x512xf32>
      tpu.vector_store %arg7[%c0_11, %c0_12], %12 {strides = array<i32>} : memref<16x512xf32, #tpu.memory_space<vmem>>, vector<16x512xf32>,
    } else {
    }
    %c0 = arith.constant 0 : index
    %c0_1 = arith.constant 0 : index
    %3 = vector.load %arg7[%c0, %c0_1] : memref<16x512xf32, #tpu.memory_space<vmem>>, vector<16x512xf32>
    %c0_2 = arith.constant 0 : index
    %c0_3 = arith.constant 0 : index
    %4 = vector.load %arg3[%c0_2, %c0_3] : memref<16x32xbf16, #tpu.memory_space<vmem>>, vector<16x32xbf16>
    %c0_4 = arith.constant 0 : index
    %c0_5 = arith.constant 0 : index
    %5 = vector.load %arg4[%c0_4, %c0_5] : memref<32x512xbf16, #tpu.memory_space<vmem>>, vector<32x512xbf16>
    %cst = arith.constant dense<0.000000e+00> : vector<16x512xf32>
    %6 = tpu.matmul %4, %5, %cst {dimension_numbers = #tpu.dot_dimension_numbers<[1], [0], [0], [1], [0, 0, 1, 1], [], []>} : vector<16x32xbf16>, vector<32x512xbf16>, vector<16x512xf32> -> vector<16x512xf32>
    %7 = arith.addf %3, %6 : vector<16x512xf32>
    %c0_6 = arith.constant 0 : index
    %c0_7 = arith.constant 0 : index
    %8 = vector.load %arg7[%c0_6, %c0_7] : memref<16x512xf32, #tpu.memory_space<vmem>>, vector<16x512xf32>
    tpu.vector_store %arg7[%c0_6, %c0_7], %7 {strides = array<i32>} : memref<16x512xf32, #tpu.memory_space<vmem>>, vector<16x512xf32>,
    %c0_i32_8 = arith.constant 0 : i32
    %9 = arith.cmpi eq, %arg2, %c0_i32_8 : i32
    %10 = arith.extui %9 : i1 to i32
    %c0_i32_9 = arith.constant 0 : i32
    %11 = arith.cmpi ne, %10, %c0_i32_9 : i32
    scf.if %11 {
      %c0_10 = arith.constant 0 : index
      %c0_11 = arith.constant 0 : index
      %12 = vector.load %arg7[%c0_10, %c0_11] : memref<16x512xf32, #tpu.memory_space<vmem>>, vector<16x512xf32>
      %c0_12 = arith.constant 0 : index
      %c0_13 = arith.constant 0 : index
      %13 = vector.load %arg5[%c0_12, %c0_13] : memref<1x512xf32, #tpu.memory_space<vmem>>, vector<1x512xf32>
      %14 = vector.broadcast %13 : vector<1x512xf32> to vector<16x512xf32>
      %15 = arith.addf %12, %14 : vector<16x512xf32>
      %cst_14 = arith.constant 0.000000e+00 : f32
      %16 = vector.broadcast %cst_14 : f32 to vector<16x512xf32>
      %17 = arith.maximumf %15, %16 : vector<16x512xf32>
      %18 = arith.truncf %17 : vector<16x512xf32> to vector<16x512xbf16>
      %c0_15 = arith.constant 0 : index
      %c0_16 = arith.constant 0 : index
      %19 = vector.load %arg6[%c0_15, %c0_16] : memref<16x512xbf16, #tpu.memory_space<vmem>>, vector<16x512xbf16>
      tpu.vector_store %arg6[%c0_15, %c0_16], %18 {strides = array<i32>} : memref<16x512xbf16, #tpu.memory_space<vmem>>, vector<16x512xbf16>,
    } else {
    }
    return
  }
  func.func @transform_0(%arg0: i32, %arg1: i32, %arg2: i32) -> (i32, i32) {
    %c0_i32 = arith.constant 0 : i32
    return %arg0, %arg2 : i32, i32
  }
  func.func @transform_1(%arg0: i32, %arg1: i32, %arg2: i32) -> (i32, i32) {
    %c0_i32 = arith.constant 0 : i32
    return %arg2, %arg1 : i32, i32
  }
  func.func @transform_2(%arg0: i32, %arg1: i32, %arg2: i32) -> (i32, i32) {
    %c0_i32 = arith.constant 0 : i32
    %c0_i32_0 = arith.constant 0 : i32
    return %c0_i32, %arg1 : i32, i32
  }
  func.func @transform_3(%arg0: i32, %arg1: i32, %arg2: i32) -> (i32, i32) {
    %c0_i32 = arith.constant 0 : i32
    return %arg0, %arg1 : i32, i32
  }
}

module attributes {stable_mosaic.version = 11 : i64} {
  func.func @_linear_kernel(%arg0: i32, %arg1: i32, %arg2: i32, %arg3: memref<16x32xbf16, #tpu.memory_space<vmem>>, %arg4: memref<32x64xbf16, #tpu.memory_space<vmem>>, %arg5: memref<1x64xf32, #tpu.memory_space<vmem>>, %arg6: memref<16x64xbf16, #tpu.memory_space<vmem>>, %arg7: memref<16x64xf32, #tpu.memory_space<vmem>>) attributes {dimension_semantics = [#tpu.dimension_semantics<parallel>, #tpu.dimension_semantics<parallel>, #tpu.dimension_semantics<arbitrary>], iteration_bounds = array<i64: 1, 1, 1>, scalar_prefetch = 0 : i64, scratch_operands = 1 : i64, tpu.core_type = #tpu.core_type<tc>, window_params = [{transform_indices = @transform_0, window_bounds = array<i64: 16, 32>}, {transform_indices = @transform_1, window_bounds = array<i64: 32, 64>}, {transform_indices = @transform_2, window_bounds = array<i64: 1, 64>}, {transform_indices = @transform_3, window_bounds = array<i64: 16, 64>}]} {
    %c0_i32 = arith.constant 0 : i32
    %0 = arith.cmpi eq, %arg2, %c0_i32 : i32
    %1 = arith.extui %0 : i1 to i32
    %c0_i32_0 = arith.constant 0 : i32
    %2 = arith.cmpi ne, %1, %c0_i32_0 : i32
    scf.if %2 {
      %cst_10 = arith.constant 0.000000e+00 : f32
      %12 = vector.broadcast %cst_10 : f32 to vector<16x64xf32>
      %c0_11 = arith.constant 0 : index
      %c0_12 = arith.constant 0 : index
      %13 = vector.load %arg7[%c0_11, %c0_12] : memref<16x64xf32, #tpu.memory_space<vmem>>, vector<16x64xf32>
      tpu.vector_store %arg7[%c0_11, %c0_12], %12 {strides = array<i32>} : memref<16x64xf32, #tpu.memory_space<vmem>>, vector<16x64xf32>,
    } else {
    }
    %c0 = arith.constant 0 : index
    %c0_1 = arith.constant 0 : index
    %3 = vector.load %arg7[%c0, %c0_1] : memref<16x64xf32, #tpu.memory_space<vmem>>, vector<16x64xf32>
    %c0_2 = arith.constant 0 : index
    %c0_3 = arith.constant 0 : index
    %4 = vector.load %arg3[%c0_2, %c0_3] : memref<16x32xbf16, #tpu.memory_space<vmem>>, vector<16x32xbf16>
    %c0_4 = arith.constant 0 : index
    %c0_5 = arith.constant 0 : index
    %5 = vector.load %arg4[%c0_4, %c0_5] : memref<32x64xbf16, #tpu.memory_space<vmem>>, vector<32x64xbf16>
    %cst = arith.constant dense<0.000000e+00> : vector<16x64xf32>
    %6 = tpu.matmul %4, %5, %cst {dimension_numbers = #tpu.dot_dimension_numbers<[1], [0], [0], [1], [0, 0, 1, 1], [], []>} : vector<16x32xbf16>, vector<32x64xbf16>, vector<16x64xf32> -> vector<16x64xf32>
    %7 = arith.addf %3, %6 : vector<16x64xf32>
    %c0_6 = arith.constant 0 : index
    %c0_7 = arith.constant 0 : index
    %8 = vector.load %arg7[%c0_6, %c0_7] : memref<16x64xf32, #tpu.memory_space<vmem>>, vector<16x64xf32>
    tpu.vector_store %arg7[%c0_6, %c0_7], %7 {strides = array<i32>} : memref<16x64xf32, #tpu.memory_space<vmem>>, vector<16x64xf32>,
    %c0_i32_8 = arith.constant 0 : i32
    %9 = arith.cmpi eq, %arg2, %c0_i32_8 : i32
    %10 = arith.extui %9 : i1 to i32
    %c0_i32_9 = arith.constant 0 : i32
    %11 = arith.cmpi ne, %10, %c0_i32_9 : i32
    scf.if %11 {
      %c0_10 = arith.constant 0 : index
      %c0_11 = arith.constant 0 : index
      %12 = vector.load %arg7[%c0_10, %c0_11] : memref<16x64xf32, #tpu.memory_space<vmem>>, vector<16x64xf32>
      %c0_12 = arith.constant 0 : index
      %c0_13 = arith.constant 0 : index
      %13 = vector.load %arg5[%c0_12, %c0_13] : memref<1x64xf32, #tpu.memory_space<vmem>>, vector<1x64xf32>
      %14 = vector.broadcast %13 : vector<1x64xf32> to vector<16x64xf32>
      %15 = arith.addf %12, %14 : vector<16x64xf32>
      %16 = arith.truncf %15 : vector<16x64xf32> to vector<16x64xbf16>
      %c0_14 = arith.constant 0 : index
      %c0_15 = arith.constant 0 : index
      %17 = vector.load %arg6[%c0_14, %c0_15] : memref<16x64xbf16, #tpu.memory_space<vmem>>, vector<16x64xbf16>
      tpu.vector_store %arg6[%c0_14, %c0_15], %16 {strides = array<i32>} : memref<16x64xbf16, #tpu.memory_space<vmem>>, vector<16x64xbf16>,
    } else {
    }
    return
  }
  func.func @transform_0(%arg0: i32, %arg1: i32, %arg2: i32) -> (i32, i32) {
    %c0_i32 = arith.constant 0 : i32
    return %arg0, %arg2 : i32, i32
  }
  func.func @transform_1(%arg0: i32, %arg1: i32, %arg2: i32) -> (i32, i32) {
    %c0_i32 = arith.constant 0 : i32
    return %arg2, %arg1 : i32, i32
  }
  func.func @transform_2(%arg0: i32, %arg1: i32, %arg2: i32) -> (i32, i32) {
    %c0_i32 = arith.constant 0 : i32
    %c0_i32_0 = arith.constant 0 : i32
    return %c0_i32, %arg1 : i32, i32
  }
  func.func @transform_3(%arg0: i32, %arg1: i32, %arg2: i32) -> (i32, i32) {
    %c0_i32 = arith.constant 0 : i32
    return %arg0, %arg1 : i32, i32
  }
}

module attributes {stable_mosaic.version = 11 : i64} {
  func.func @_linear_kernel(%arg0: i32, %arg1: i32, %arg2: i32, %arg3: memref<16x512xbf16, #tpu.memory_space<vmem>>, %arg4: memref<512x32xbf16, #tpu.memory_space<vmem>>, %arg5: memref<1x32xf32, #tpu.memory_space<vmem>>, %arg6: memref<16x32xf32, #tpu.memory_space<vmem>>, %arg7: memref<16x32xf32, #tpu.memory_space<vmem>>) attributes {dimension_semantics = [#tpu.dimension_semantics<parallel>, #tpu.dimension_semantics<parallel>, #tpu.dimension_semantics<arbitrary>], iteration_bounds = array<i64: 1, 1, 4>, scalar_prefetch = 0 : i64, scratch_operands = 1 : i64, tpu.core_type = #tpu.core_type<tc>, window_params = [{transform_indices = @transform_0, window_bounds = array<i64: 16, 512>}, {transform_indices = @transform_1, window_bounds = array<i64: 512, 32>}, {transform_indices = @transform_2, window_bounds = array<i64: 1, 32>}, {transform_indices = @transform_3, window_bounds = array<i64: 16, 32>}]} {
    %c0_i32 = arith.constant 0 : i32
    %0 = arith.cmpi eq, %arg2, %c0_i32 : i32
    %1 = arith.extui %0 : i1 to i32
    %c0_i32_0 = arith.constant 0 : i32
    %2 = arith.cmpi ne, %1, %c0_i32_0 : i32
    scf.if %2 {
      %cst_9 = arith.constant 0.000000e+00 : f32
      %12 = vector.broadcast %cst_9 : f32 to vector<16x32xf32>
      %c0_10 = arith.constant 0 : index
      %c0_11 = arith.constant 0 : index
      %13 = vector.load %arg7[%c0_10, %c0_11] : memref<16x32xf32, #tpu.memory_space<vmem>>, vector<16x32xf32>
      tpu.vector_store %arg7[%c0_10, %c0_11], %12 {strides = array<i32>} : memref<16x32xf32, #tpu.memory_space<vmem>>, vector<16x32xf32>,
    } else {
    }
    %c0 = arith.constant 0 : index
    %c0_1 = arith.constant 0 : index
    %3 = vector.load %arg7[%c0, %c0_1] : memref<16x32xf32, #tpu.memory_space<vmem>>, vector<16x32xf32>
    %c0_2 = arith.constant 0 : index
    %c0_3 = arith.constant 0 : index
    %4 = vector.load %arg3[%c0_2, %c0_3] : memref<16x512xbf16, #tpu.memory_space<vmem>>, vector<16x512xbf16>
    %c0_4 = arith.constant 0 : index
    %c0_5 = arith.constant 0 : index
    %5 = vector.load %arg4[%c0_4, %c0_5] : memref<512x32xbf16, #tpu.memory_space<vmem>>, vector<512x32xbf16>
    %cst = arith.constant dense<0.000000e+00> : vector<16x32xf32>
    %6 = tpu.matmul %4, %5, %cst {dimension_numbers = #tpu.dot_dimension_numbers<[1], [0], [0], [1], [0, 0, 1, 1], [], []>} : vector<16x512xbf16>, vector<512x32xbf16>, vector<16x32xf32> -> vector<16x32xf32>
    %7 = arith.addf %3, %6 : vector<16x32xf32>
    %c0_6 = arith.constant 0 : index
    %c0_7 = arith.constant 0 : index
    %8 = vector.load %arg7[%c0_6, %c0_7] : memref<16x32xf32, #tpu.memory_space<vmem>>, vector<16x32xf32>
    tpu.vector_store %arg7[%c0_6, %c0_7], %7 {strides = array<i32>} : memref<16x32xf32, #tpu.memory_space<vmem>>, vector<16x32xf32>,
    %c3_i32 = arith.constant 3 : i32
    %9 = arith.cmpi eq, %arg2, %c3_i32 : i32
    %10 = arith.extui %9 : i1 to i32
    %c0_i32_8 = arith.constant 0 : i32
    %11 = arith.cmpi ne, %10, %c0_i32_8 : i32
    scf.if %11 {
      %c0_9 = arith.constant 0 : index
      %c0_10 = arith.constant 0 : index
      %12 = vector.load %arg7[%c0_9, %c0_10] : memref<16x32xf32, #tpu.memory_space<vmem>>, vector<16x32xf32>
      %c0_11 = arith.constant 0 : index
      %c0_12 = arith.constant 0 : index
      %13 = vector.load %arg5[%c0_11, %c0_12] : memref<1x32xf32, #tpu.memory_space<vmem>>, vector<1x32xf32>
      %14 = vector.broadcast %13 : vector<1x32xf32> to vector<16x32xf32>
      %15 = arith.addf %12, %14 : vector<16x32xf32>
      %c0_13 = arith.constant 0 : index
      %c0_14 = arith.constant 0 : index
      %16 = vector.load %arg6[%c0_13, %c0_14] : memref<16x32xf32, #tpu.memory_space<vmem>>, vector<16x32xf32>
      tpu.vector_store %arg6[%c0_13, %c0_14], %15 {strides = array<i32>} : memref<16x32xf32, #tpu.memory_space<vmem>>, vector<16x32xf32>,
    } else {
    }
    return
  }
  func.func @transform_0(%arg0: i32, %arg1: i32, %arg2: i32) -> (i32, i32) {
    %c0_i32 = arith.constant 0 : i32
    return %arg0, %arg2 : i32, i32
  }
  func.func @transform_1(%arg0: i32, %arg1: i32, %arg2: i32) -> (i32, i32) {
    %c0_i32 = arith.constant 0 : i32
    return %arg2, %arg1 : i32, i32
  }
  func.func @transform_2(%arg0: i32, %arg1: i32, %arg2: i32) -> (i32, i32) {
    %c0_i32 = arith.constant 0 : i32
    %c0_i32_0 = arith.constant 0 : i32
    return %c0_i32, %arg1 : i32, i32
  }
  func.func @transform_3(%arg0: i32, %arg1: i32, %arg2: i32) -> (i32, i32) {
    %c0_i32 = arith.constant 0 : i32
    return %arg0, %arg1 : i32, i32
  }
}

module attributes {stable_mosaic.version = 11 : i64} {
  func.func @_linear_kernel(%arg0: i32, %arg1: i32, %arg2: i32, %arg3: memref<16x32xbf16, #tpu.memory_space<vmem>>, %arg4: memref<32x16xbf16, #tpu.memory_space<vmem>>, %arg5: memref<1x16xf32, #tpu.memory_space<vmem>>, %arg6: memref<16x16xf32, #tpu.memory_space<vmem>>, %arg7: memref<16x16xf32, #tpu.memory_space<vmem>>) attributes {dimension_semantics = [#tpu.dimension_semantics<parallel>, #tpu.dimension_semantics<parallel>, #tpu.dimension_semantics<arbitrary>], iteration_bounds = array<i64: 1, 1, 1>, scalar_prefetch = 0 : i64, scratch_operands = 1 : i64, tpu.core_type = #tpu.core_type<tc>, window_params = [{transform_indices = @transform_0, window_bounds = array<i64: 16, 32>}, {transform_indices = @transform_1, window_bounds = array<i64: 32, 16>}, {transform_indices = @transform_2, window_bounds = array<i64: 1, 16>}, {transform_indices = @transform_3, window_bounds = array<i64: 16, 16>}]} {
    %c0_i32 = arith.constant 0 : i32
    %0 = arith.cmpi eq, %arg2, %c0_i32 : i32
    %1 = arith.extui %0 : i1 to i32
    %c0_i32_0 = arith.constant 0 : i32
    %2 = arith.cmpi ne, %1, %c0_i32_0 : i32
    scf.if %2 {
      %cst_10 = arith.constant 0.000000e+00 : f32
      %12 = vector.broadcast %cst_10 : f32 to vector<16x16xf32>
      %c0_11 = arith.constant 0 : index
      %c0_12 = arith.constant 0 : index
      %13 = vector.load %arg7[%c0_11, %c0_12] : memref<16x16xf32, #tpu.memory_space<vmem>>, vector<16x16xf32>
      tpu.vector_store %arg7[%c0_11, %c0_12], %12 {strides = array<i32>} : memref<16x16xf32, #tpu.memory_space<vmem>>, vector<16x16xf32>,
    } else {
    }
    %c0 = arith.constant 0 : index
    %c0_1 = arith.constant 0 : index
    %3 = vector.load %arg7[%c0, %c0_1] : memref<16x16xf32, #tpu.memory_space<vmem>>, vector<16x16xf32>
    %c0_2 = arith.constant 0 : index
    %c0_3 = arith.constant 0 : index
    %4 = vector.load %arg3[%c0_2, %c0_3] : memref<16x32xbf16, #tpu.memory_space<vmem>>, vector<16x32xbf16>
    %c0_4 = arith.constant 0 : index
    %c0_5 = arith.constant 0 : index
    %5 = vector.load %arg4[%c0_4, %c0_5] : memref<32x16xbf16, #tpu.memory_space<vmem>>, vector<32x16xbf16>
    %cst = arith.constant dense<0.000000e+00> : vector<16x16xf32>
    %6 = tpu.matmul %4, %5, %cst {dimension_numbers = #tpu.dot_dimension_numbers<[1], [0], [0], [1], [0, 0, 1, 1], [], []>} : vector<16x32xbf16>, vector<32x16xbf16>, vector<16x16xf32> -> vector<16x16xf32>
    %7 = arith.addf %3, %6 : vector<16x16xf32>
    %c0_6 = arith.constant 0 : index
    %c0_7 = arith.constant 0 : index
    %8 = vector.load %arg7[%c0_6, %c0_7] : memref<16x16xf32, #tpu.memory_space<vmem>>, vector<16x16xf32>
    tpu.vector_store %arg7[%c0_6, %c0_7], %7 {strides = array<i32>} : memref<16x16xf32, #tpu.memory_space<vmem>>, vector<16x16xf32>,
    %c0_i32_8 = arith.constant 0 : i32
    %9 = arith.cmpi eq, %arg2, %c0_i32_8 : i32
    %10 = arith.extui %9 : i1 to i32
    %c0_i32_9 = arith.constant 0 : i32
    %11 = arith.cmpi ne, %10, %c0_i32_9 : i32
    scf.if %11 {
      %c0_10 = arith.constant 0 : index
      %c0_11 = arith.constant 0 : index
      %12 = vector.load %arg7[%c0_10, %c0_11] : memref<16x16xf32, #tpu.memory_space<vmem>>, vector<16x16xf32>
      %c0_12 = arith.constant 0 : index
      %c0_13 = arith.constant 0 : index
      %13 = vector.load %arg5[%c0_12, %c0_13] : memref<1x16xf32, #tpu.memory_space<vmem>>, vector<1x16xf32>
      %14 = vector.broadcast %13 : vector<1x16xf32> to vector<16x16xf32>
      %15 = arith.addf %12, %14 : vector<16x16xf32>
      %c0_14 = arith.constant 0 : index
      %c0_15 = arith.constant 0 : index
      %16 = vector.load %arg6[%c0_14, %c0_15] : memref<16x16xf32, #tpu.memory_space<vmem>>, vector<16x16xf32>
      tpu.vector_store %arg6[%c0_14, %c0_15], %15 {strides = array<i32>} : memref<16x16xf32, #tpu.memory_space<vmem>>, vector<16x16xf32>,
    } else {
    }
    return
  }
  func.func @transform_0(%arg0: i32, %arg1: i32, %arg2: i32) -> (i32, i32) {
    %c0_i32 = arith.constant 0 : i32
    return %arg0, %arg2 : i32, i32
  }
  func.func @transform_1(%arg0: i32, %arg1: i32, %arg2: i32) -> (i32, i32) {
    %c0_i32 = arith.constant 0 : i32
    return %arg2, %arg1 : i32, i32
  }
  func.func @transform_2(%arg0: i32, %arg1: i32, %arg2: i32) -> (i32, i32) {
    %c0_i32 = arith.constant 0 : i32
    %c0_i32_0 = arith.constant 0 : i32
    return %c0_i32, %arg1 : i32, i32
  }
  func.func @transform_3(%arg0: i32, %arg1: i32, %arg2: i32) -> (i32, i32) {
    %c0_i32 = arith.constant 0 : i32
    return %arg0, %arg1 : i32, i32
  }
}

</mosaic_0001>

<bundles_post_ra>
// kernel: transformer_lm_forward.25
= control target key start
LH: loop header
LB: loop body
LE: loop exit
PB: predicated region body
PF: predicated region fallthrough
CT: control target
= control target key end

     0   :  { %vm19_vm0 = vcmask 785408   ;;  %v108_v1 = vmov 0.0   ;;  %vm47_vm1 = vcmask 261120   ;;  %vm83_vm2 = vcmask 781312   ;;  %s151_s1 = inlined_call_operand.vmem [shape: bf16[32,96], index: 1, kind: input, shape index: {}]   ;;  %s152_s2 = inlined_call_operand.vmem [shape: f32[1,96], index: 2, kind: input, shape index: {}]   ;;  %s153_s0 = inlined_call_operand.vmem [shape: bf16[16,32], index: 0, kind: input, shape index: {}]   ;;  %s154_s3 = inlined_call_operand.vmem [shape: bf16[16,96], index: 3, kind: output, shape index: {}]  }
   0x1   :  { %v105_v0 = vld [vmem:[%s151_s1 + $0x8] sm:$0xff]  ;;  %20 = vst.msk [vmem:[#allocation2] sm:$0xff] %vm19_vm0, %v108_v1  ;;  %v104_v2 = vld [vmem:[%s151_s1] sm:$0xff] }
   0x2   :  { %21 = vst.msk [vmem:[#allocation2 + $0x8] sm:$0xff] %vm19_vm0, %v108_v1  ;;  %57 = vmatpush.bf16.msra.mxu0 %v105_v0  ;;  %v103_v3 = vld [vmem:[%s153_s0] sm:$0xff] }
   0x3   :  { %v107_v8 = vld [vmem:[%s152_s2] ss:$0 sm:$0xff] }
   0x6   :  { %58 = vmatpush.bf16.msra.mxu0 %v104_v2 }
   0x8   :  { %v22_v4 = vld [vmem:[#allocation2] sm:$0xff] }
   0x9   :  { %102 = vmatmul.msk.bf16.vlgmr.msra.gmra.mxu0 %vm47_vm1, %v103_v3  ;;  %v23_v7 = vld [vmem:[#allocation2 + $0x8] sm:$0xff] }
  0x86   :  { %v60_v5 = vpop.f32.mrf.mxu0 }
  0x87   :  { %v65_v6 = vadd.f32 %v60_v5, %v22_v4 }
  0x89   :  { %68 = vst.msk [vmem:[#allocation2] sm:$0xff] %vm19_vm0, %v65_v6 }
  0x8e   :  { %v62_v9 = vpop.f32.mrf.mxu0 }
  0x8f   :  { %v66_v10 = vadd.f32 %v62_v9, %v23_v7 }
  0x90   :  { %v73_v11 = vld [vmem:[#allocation2] sm:$0xff] }
  0x91   :  { %v79_v12 = vadd.f32 %v107_v8, %v73_v11  ;;  %69 = vst.msk [vmem:[#allocation2 + $0x8] sm:$0xff] %vm19_vm0, %v66_v10 }
  0x93   :  { %v81_v13 = vpack.c.bf16 %v79_v12, %v79_v12 }
  0x95   :  { %84 = vst.msk [vmem:[%s154_s3] sm:$0xf] %vm83_vm2, %v81_v13 }
  0x98   :  { %v74_v14 = vld [vmem:[#allocation2 + $0x8] sm:$0xff] }
  0x99   :  { %v80_v15 = vadd.f32 %v107_v8, %v74_v14 }
  0x9b   :  { %v82_v16 = vpack.c.bf16 %v80_v15, %v80_v15 }
  0x9d   :  { %85 = vst.msk [vmem:[%s154_s3 + $0x4] sm:$0xf] %vm83_vm2, %v82_v16 }

// kernel: transformer_lm_forward.27
= control target key start
LH: loop header
LB: loop body
LE: loop exit
PB: predicated region body
PF: predicated region fallthrough
CT: control target
= control target key end

     0   :  { %vm19_vm0 = vcmask 261120   ;;  %v104_v1 = vmov 0.0   ;;  %s150_s1 = inlined_call_operand.vmem [shape: bf16[32,32], index: 1, kind: input, shape index: {}]   ;;  %s151_s2 = inlined_call_operand.vmem [shape: f32[1,32], index: 2, kind: input, shape index: {}]   ;;  %s152_s0 = inlined_call_operand.vmem [shape: bf16[16,32], index: 0, kind: input, shape index: {}]   ;;  %s153_s3 = inlined_call_operand.vmem [shape: f32[16,32], index: 3, kind: output, shape index: {}]  }
   0x1   :  { %v101_v0 = vld [vmem:[%s150_s1 + $0x8] sm:$0xff]  ;;  %20 = vst.msk [vmem:[#allocation2] sm:$0xff] %vm19_vm0, %v104_v1  ;;  %v100_v2 = vld [vmem:[%s150_s1] sm:$0xff] }
   0x2   :  { %21 = vst.msk [vmem:[#allocation2 + $0x8] sm:$0xff] %vm19_vm0, %v104_v1  ;;  %57 = vmatpush.bf16.msra.mxu0 %v101_v0  ;;  %v99_v3 = vld [vmem:[%s152_s0] sm:$0xff] }
   0x3   :  { %v103_v8 = vld [vmem:[%s151_s2] ss:$0 sm:$0xff] }
   0x6   :  { %58 = vmatpush.bf16.msra.mxu0 %v100_v2 }
   0x8   :  { %v22_v4 = vld [vmem:[#allocation2] sm:$0xff] }
   0x9   :  { %98 = vmatmul.msk.bf16.vlgmr.msra.gmra.mxu0 %vm19_vm0, %v99_v3  ;;  %v23_v7 = vld [vmem:[#allocation2 + $0x8] sm:$0xff] }
  0x86   :  { %v60_v5 = vpop.f32.mrf.mxu0 }
  0x87   :  { %v65_v6 = vadd.f32 %v60_v5, %v22_v4 }
  0x89   :  { %67 = vst.msk [vmem:[#allocation2] sm:$0xff] %vm19_vm0, %v65_v6 }
  0x8e   :  { %v62_v9 = vpop.f32.mrf.mxu0 }
  0x8f   :  { %v66_v10 = vadd.f32 %v62_v9, %v23_v7 }
  0x90   :  { %v72_v11 = vld [vmem:[#allocation2] sm:$0xff] }
  0x91   :  { %v78_v12 = vadd.f32 %v103_v8, %v72_v11  ;;  %68 = vst.msk [vmem:[#allocation2 + $0x8] sm:$0xff] %vm19_vm0, %v66_v10 }
  0x93   :  { %80 = vst.msk [vmem:[%s153_s3] sm:$0xff] %vm19_vm0, %v78_v12 }
  0x98   :  { %v73_v13 = vld [vmem:[#allocation2 + $0x8] sm:$0xff] }
  0x99   :  { %v79_v14 = vadd.f32 %v103_v8, %v73_v13 }
  0x9b   :  { %81 = vst.msk [vmem:[%s153_s3 + $0x8] sm:$0xff] %vm19_vm0, %v79_v14 }

// kernel: transformer_lm_forward.26
= control target key start
LH: loop header
LB: loop body
LE: loop exit
PB: predicated region body
PF: predicated region fallthrough
CT: control target
= control target key end

     0   :  { %s608_s12 = smov 0   ;;  %s661_s0 = inlined_call_operand.vmem [shape: bf16[2,4,8,8], index: 0, kind: input, shape index: {}]   ;;  %s662_s1 = inlined_call_operand.vmem [shape: bf16[2,4,8,8], index: 1, kind: input, shape index: {}]   ;;  %s663_s2 = inlined_call_operand.vmem [shape: bf16[2,4,8,8], index: 2, kind: input, shape index: {}]   ;;  %s664_s3 = inlined_call_operand.vmem [shape: bf16[2,4,8,8], index: 3, kind: output, shape index: {}]  }
   0x1 LB: > { %s529_s13 = sadd.s32 4294967295, %s586_s12   ;;  %p533_p0 = scmp.ge.s32.totalorder %s586_s12, 1  ;;  %s586_s12 = sphi %s608_s12, %s13_s12  }
   0x2   : > { %p157_p1 = scmp.lt.s32.totalorder %s586_s12, 3 }
   0x4   : > { %p158_p2 = pnand %p533_p0, %p157_p1 }
   0x5   : > { %p191_p3 = scmp.lt.s32.totalorder (!%p158_p2), %s529_s13, 1 }
   0x6   : > { %161 = sbr.rel (%p158_p2) target bundleno = 562 (0x232), region = 32 }
   0xb   : > { %s666_s13 = smov (!%p191_p3, %s529_s13), 1  ;;  %vm224_vm0 = vcmask 64512   ;;  %v305_v12 = vlaneseq  ;;  %vm367_vm2 = vcmask 1043456   ;;  %vm445_vm3 = vcmask 60416  }
   0xc   : > { %s616_s14 = sshll.u32 %s666_s13, 4 }
   0xd   : > { %s200_s17 = scalar_lea.vmem %s662_s1, %s616_s14  ;;  %s195_s20 = scalar_lea.vmem %s661_s0, %s616_s14  ;;  %v306_v13 = vshrl.u32 %v305_v12, 7  ;;  %v308_v14 = vand.u32 127, %v305_v12 }
   0xe   : > { %v216_v0 = vld [vmem:[%s200_s17] sm:$0xf]  ;;  %v218_v1 = vld [vmem:[%s200_s17 + $0x8] sm:$0xf]  ;;  %v219_v2 = vld [vmem:[%s200_s17 + $0xc] sm:$0xf]  ;;  %s205_s23 = scalar_lea.vmem %s663_s2, %s616_s14  ;;  %s210_s26 = scalar_lea.vmem %s664_s3, %s616_s14 }
   0xf   : > { %v229_v3 = vsel %vm224_vm0, %v216_v0, 0  ;;  %v267_v4 = vsel %vm224_vm0, %v218_v1, 0  ;;  %v286_v5 = vsel %vm224_vm0, %v219_v2, 0  ;;  %v217_v6 = vld [vmem:[%s200_s17 + $0x4] sm:$0xf]  ;;  %vm309_vm1 = vcmp.le.s32.totalorder %v308_v14, %v306_v13 }
  0x10   : > { %238 = vmatpush.bf16.xpose.msra.mxu0 %v229_v3  ;;  %276 = vmatpush.bf16.xpose.msra.mxu2 %v267_v4  ;;  %v248_v7 = vsel %vm224_vm0, %v217_v6, 0  ;;  %v212_v8 = vld [vmem:[%s195_s20] sm:$0xf]  ;;  %v214_v9 = vld [vmem:[%s195_s20 + $0x8] sm:$0xf] }
  0x11   : > { %295 = vmatpush.bf16.xpose.msra.mxu3 %v286_v5  ;;  %257 = vmatpush.bf16.xpose.msra.mxu1 %v248_v7  ;;  %v215_v10 = vld [vmem:[%s195_s20 + $0xc] sm:$0xf]  ;;  %v213_v11 = vld [vmem:[%s195_s20 + $0x4] sm:$0xf]  ;;  %v220_v55 = vld [vmem:[%s205_s23] sm:$0xf] }
  0x12   : > { %v369_v56 = vsel %vm367_vm2, %v220_v55, 0  ;;  %v222_v57 = vld [vmem:[%s205_s23 + $0x8] sm:$0xf]  ;;  %v221_v59 = vld [vmem:[%s205_s23 + $0x4] sm:$0xf] }
  0x13   : > { %v407_v58 = vsel %vm367_vm2, %v222_v57, 0  ;;  %v388_v60 = vsel %vm367_vm2, %v221_v59, 0  ;;  %v223_v61 = vld [vmem:[%s205_s23 + $0xc] sm:$0xf] }
  0x14   : > { %v426_v62 = vsel %vm367_vm2, %v223_v61, 0 }
  0x17   : > { %542 = vmatmul.msk.bf16.vlgmr.msra.gmra.mxu0 %vm224_vm0, %v212_v8  ;;  %544 = vmatmul.msk.bf16.vlgmr.msra.gmra.mxu2 %vm224_vm0, %v214_v9 }
  0x18   : > { %545 = vmatmul.msk.bf16.vlgmr.msra.gmra.mxu3 %vm224_vm0, %v215_v10  ;;  %543 = vmatmul.msk.bf16.vlgmr.msra.gmra.mxu1 %vm224_vm0, %v213_v11 }
  0x19   : > { %378 = vmatpush.bf16.msrb.mxu0 %v369_v56  ;;  %416 = vmatpush.bf16.msrb.mxu2 %v407_v58 }
  0x1a   : > { %397 = vmatpush.bf16.msrb.mxu1 %v388_v60  ;;  %435 = vmatpush.bf16.msrb.mxu3 %v426_v62 }
  0x94   : > { %v240_v15 = vpop.f32.mrf.mxu0 }
  0x95   : > { %v301_v16 = vmul.f32 0.35355338, %v240_v15  ;;  %v259_v17 = vpop.f32.mrf.mxu1 }
  0x96   : > { %v302_v19 = vmul.f32 0.35355338, %v259_v17 }
  0x97   : > { %v312_v18 = vsel %vm309_vm1, %v301_v16, -1e+30 }
  0x98   : > { %v316_v20 = vsel %vm224_vm0, %v312_v18, -inf  ;;  %v313_v24 = vsel %vm309_vm1, %v302_v19, -1e+30 }
  0x99   : > { %317 = vmax.xlane.f32.xlu1 %v316_v20  ;;  %v319_v29 = vsel %vm224_vm0, %v313_v24, -inf }
  0x9a   : > { %v278_v21 = vpop.f32.mrf.mxu2 }
  0x9b   : > { %v303_v22 = vmul.f32 0.35355338, %v278_v21  ;;  %v297_v23 = vpop.f32.mrf.mxu3 }
  0x9c   : > { %v242_v25 = vpop.f32.mrf.mxu0  ;;  %v304_v26 = vmul.f32 0.35355338, %v297_v23 }
  0x9d   : > { %v314_v27 = vsel %vm309_vm1, %v303_v22, -1e+30  ;;  %v261_v30 = vpop.f32.mrf.mxu1 }
  0x9e   : > { %v322_v28 = vsel %vm224_vm0, %v314_v27, -inf  ;;  %v315_v31 = vsel %vm309_vm1, %v304_v26, -1e+30 }
  0x9f   : > { %323 = vmax.xlane.f32.xlu0 %v322_v28  ;;  %v325_v34 = vsel %vm224_vm0, %v315_v31, -inf }
  0xa1   : > { %320 = vmax.xlane.f32.xlu1 %v319_v29 }
  0xa2   : > { %v280_v32 = vpop.f32.mrf.mxu2 }
  0xa3   : > { %v299_v33 = vpop.f32.mrf.mxu3 }
  0xa7   : > { %326 = vmax.xlane.f32.xlu0 %v325_v34 }
 0x10c   : > { %v318_v35 = vpop.xlane.xlu1 %317 }
 0x10d   : > { %v328_v36 = vsub.f32 %v312_v18, %v318_v35 }
 0x10f   : > { %v332_v37 = vmul.f32 1.442695, %v328_v36 }
 0x111   : > { %564 = vpow2.f32 %v332_v37 }
 0x112   : > { %v324_v38 = vpop.xlane.xlu0 %323 }
 0x113   : > { %v330_v39 = vsub.f32 %v314_v27, %v324_v38 }
 0x114   : > { %v321_v40 = vpop.xlane.xlu1 %320 }
 0x115   : > { %v336_v41 = vmul.f32 1.442695, %v330_v39  ;;  %v329_v42 = vsub.f32 %v313_v24, %v321_v40 }
 0x117   : > { %v565_v43 = vpop.eup %564  ;;  %566 = vpow2.f32 %v336_v41  ;;  %v334_v44 = vmul.f32 1.442695, %v329_v42 }
 0x118   : > { %v340_v45 = vsel %vm224_vm0, %v565_v43, 0.0 }
 0x119   : > { %568 = vpow2.f32 %v334_v44  ;;  %341 = vadd.xlane.f32.xlu0 %v340_v45 }
 0x11a   : > { %v327_v46 = vpop.xlane.xlu0 %326 }
 0x11b   : > { %v331_v47 = vsub.f32 %v315_v31, %v327_v46 }
 0x11d   : > { %v567_v48 = vpop.eup %566  ;;  %v338_v49 = vmul.f32 1.442695, %v331_v47 }
 0x11e   : > { %v346_v50 = vsel %vm224_vm0, %v567_v48, 0.0 }
 0x11f   : > { %v569_v51 = vpop.eup %568  ;;  %570 = vpow2.f32 %v338_v49  ;;  %347 = vadd.xlane.f32.xlu2 %v346_v50 }
 0x120   : > { %v343_v52 = vsel %vm224_vm0, %v569_v51, 0.0 }
 0x121   : > { %344 = vadd.xlane.f32.xlu1 %v343_v52 }
 0x125   : > { %v571_v53 = vpop.eup %570 }
 0x126   : > { %v349_v54 = vsel %vm224_vm0, %v571_v53, 0.0 }
 0x127   : > { %350 = vadd.xlane.f32.xlu2 %v349_v54 }
 0x18c   : > { %v342_v63 = vpop.xlane.xlu0 %341 }
 0x18d   : > { %572 = vrcp.f32 %v342_v63 }
 0x192   : > { %v348_v0 = vpop.xlane.xlu2 %347 }
 0x193   : > { %v573_v1 = vpop.eup %572  ;;  %574 = vrcp.f32 %v348_v0 }
 0x194   : > { %v356_v2 = vmul.f32 %v573_v1, %v565_v43  ;;  %v345_v3 = vpop.xlane.xlu1 %344 }
 0x195   : > { %576 = vrcp.f32 %v345_v3 }
 0x196   : > { %v360_v4 = vpack.c.bf16 %v356_v2, %v356_v2 }
 0x198   : > { %546 = vmatmul.msk.bf16.vlgmr.msrb.gmra.mxu0 %vm224_vm0, %v360_v4 }
 0x199   : > { %v575_v5 = vpop.eup %574 }
 0x19a   : > { %v358_v6 = vmul.f32 %v575_v5, %v567_v48  ;;  %v351_v7 = vpop.xlane.xlu2 %350 }
 0x19b   : > { %v577_v8 = vpop.eup %576  ;;  %578 = vrcp.f32 %v351_v7 }
 0x19c   : > { %v357_v9 = vmul.f32 %v577_v8, %v569_v51  ;;  %v362_v10 = vpack.c.bf16 %v358_v6, %v358_v6 }
 0x19e   : > { %v361_v11 = vpack.c.bf16 %v357_v9, %v357_v9  ;;  %548 = vmatmul.msk.bf16.vlgmr.msrb.gmra.mxu2 %vm224_vm0, %v362_v10 }
 0x1a0   : > { %547 = vmatmul.msk.bf16.vlgmr.msrb.gmra.mxu1 %vm224_vm0, %v361_v11 }
 0x1a1   : > { %v579_v12 = vpop.eup %578 }
 0x1a2   : > { %v359_v13 = vmul.f32 %v579_v12, %v571_v53 }
 0x1a4   : > { %v363_v14 = vpack.c.bf16 %v359_v13, %v359_v13 }
 0x1a6   : > { %549 = vmatmul.msk.bf16.vlgmr.msrb.gmra.mxu3 %vm224_vm0, %v363_v14 }
 0x215   : > { %v380_v15 = vpop.f32.mrf.mxu0 }
 0x216   : > { %v441_v16 = vpack.c.bf16 %v380_v15, %v380_v15 }
 0x218   : > { %446 = vst.msk [vmem:[%s210_s26] sm:$0xf] %vm445_vm3, %v441_v16 }
 0x21d   : > { %v382_v17 = vpop.f32.mrf.mxu0  ;;  %v399_v18 = vpop.f32.mrf.mxu1 }
 0x21e   : > { %v442_v19 = vpack.c.bf16 %v399_v18, %v399_v18 }
 0x220   : > { %447 = vst.msk [vmem:[%s210_s26 + $0x4] sm:$0xf] %vm445_vm3, %v442_v19 }
 0x221   : > { %v418_v20 = vpop.f32.mrf.mxu2 }
 0x222   : > { %v443_v21 = vpack.c.bf16 %v418_v20, %v418_v20 }
 0x224   : > { %448 = vst.msk [vmem:[%s210_s26 + $0x8] sm:$0xf] %vm445_vm3, %v443_v21 }
 0x225   : > { %v401_v22 = vpop.f32.mrf.mxu1 }
 0x229   : > { %v420_v23 = vpop.f32.mrf.mxu2  ;;  %v437_v24 = vpop.f32.mrf.mxu3 }
 0x22a   : > { %v444_v25 = vpack.c.bf16 %v437_v24, %v437_v24 }
 0x22c   : > { %449 = vst.msk [vmem:[%s210_s26 + $0xc] sm:$0xf] %vm445_vm3, %v444_v25 }
 0x231   : > { %v439_v26 = vpop.f32.mrf.mxu3 }
 0x232 PF: > { %s13_s12 = sadd.s32 1, %s586_s12  }
 0x233   : > { %p10_p4 = scmp.ge.s32.totalorder %s13_s12, 4  }
 0x235   :  { %12 = sbr.rel (!%p10_p4) target bundleno = 1 (0x1), region = 68 }

// kernel: transformer_lm_forward.28
= control target key start
LH: loop header
LB: loop body
LE: loop exit
PB: predicated region body
PF: predicated region fallthrough
CT: control target
= control target key end

     0   :  { %vm23_vm0 = vcmask 261120   ;;  %v102_v8 = vmov 32.0   ;;  %s158_s0 = inlined_call_operand.vmem [shape: f32[16,32], index: 0, kind: input, shape index: {}]   ;;  %s159_s1 = inlined_call_operand.vmem [shape: f32[16,32], index: 1, kind: input, shape index: {}]   ;;  %s160_s2 = inlined_call_operand.vmem [shape: f32[1,32], index: 2, kind: input, shape index: {}]   ;;  %s161_s3 = inlined_call_operand.vmem [shape: f32[1,32], index: 3, kind: input, shape index: {}]   ;;  %s162_s4 = inlined_call_operand.vmem [shape: f32[16,32], index: 4, kind: output, shape index: {}]  }
   0x1   :  { %v17_v0 = vld [vmem:[%s158_s0] sm:$0xff]  ;;  %v18_v3 = vld [vmem:[%s158_s0 + $0x8] sm:$0xff]  ;;  %96 = vrcp.f32 %v102_v8 }
   0x2   :  { %v19_v1 = vld [vmem:[%s159_s1] sm:$0xff]  ;;  %v20_v4 = vld [vmem:[%s159_s1 + $0x8] sm:$0xff] }
   0x3   :  { %v21_v2 = vadd.f32 %v19_v1, %v17_v0  ;;  %v22_v6 = vadd.f32 %v20_v4, %v18_v3  ;;  %v94_v39 = vld [vmem:[%s160_s2] ss:$0 sm:$0xff] }
   0x4   :  { %v95_v42 = vld [vmem:[%s161_s3] ss:$0 sm:$0xff] }
   0x5   :  { %v24_v5 = vsel %vm23_vm0, %v21_v2, 0.0  ;;  %v27_v7 = vsel %vm23_vm0, %v22_v6, 0.0 }
   0x6   :  { %25 = vadd.xlane.f32.xlu0 %v24_v5 }
   0x7   :  { %v97_v9 = vpop.eup %96 }
   0x8   :  { %v31_v10 = vmul.f32 32.0, %v97_v9  ;;  %vm35_vm1 = vweird.f32 %v97_v9 }
   0xa   :  { %v32_v11 = vsub.f32 1.0, %v31_v10 }
   0xc   :  { %v33_v12 = vmul.f32 %v97_v9, %v32_v11 }
   0xe   :  { %28 = vadd.xlane.f32.xlu0 %v27_v7  ;;  %v34_v13 = vadd.f32 %v97_v9, %v33_v12 }
  0x10   :  { %v36_v14 = vsel %vm35_vm1, %v97_v9, %v34_v13 }
  0x79   :  { %v26_v15 = vpop.xlane.xlu0 %25 }
  0x7a   :  { %v37_v16 = vmul.f32 %v36_v14, %v26_v15 }
  0x7c   :  { %v39_v17 = vsub.f32 %v21_v2, %v37_v16 }
  0x7e   :  { %v41_v18 = vmul.f32 %v39_v17, %v39_v17 }
  0x80   :  { %v43_v19 = vsel %vm23_vm0, %v41_v18, 0.0 }
  0x81   :  { %44 = vadd.xlane.f32.xlu1 %v43_v19  ;;  %v29_v20 = vpop.xlane.xlu0 %28 }
  0x82   :  { %v38_v21 = vmul.f32 %v36_v14, %v29_v20 }
  0x84   :  { %v40_v22 = vsub.f32 %v22_v6, %v38_v21 }
  0x86   :  { %v42_v23 = vmul.f32 %v40_v22, %v40_v22 }
  0x88   :  { %v46_v24 = vsel %vm23_vm0, %v42_v23, 0.0 }
  0x89   :  { %47 = vadd.xlane.f32.xlu1 %v46_v24 }
  0xf4   :  { %v45_v25 = vpop.xlane.xlu1 %44 }
  0xf5   :  { %v49_v26 = vmul.f32 %v45_v25, %v36_v14 }
  0xf7   :  { %v51_v27 = vadd.f32 1e-05, %v49_v26 }
  0xf9   :  { %98 = vrsqrt.f32 %v51_v27  ;;  %vm59_vm3 = vweird.f32 %v51_v27 }
  0xfc   :  { %v48_v28 = vpop.xlane.xlu1 %47 }
  0xfd   :  { %v50_v29 = vmul.f32 %v48_v28, %v36_v14 }
  0xff   :  { %v99_v30 = vpop.eup %98  ;;  %v52_v31 = vadd.f32 1e-05, %v50_v29 }
 0x100   :  { %v54_v32 = vmul.f32 %v99_v30, %v51_v27  ;;  %vm60_vm2 = vweird.f32 %v99_v30 }
 0x101   :  { %100 = vrsqrt.f32 %v52_v31  ;;  %vm61_vm4 = vmor %vm59_vm3, %vm60_vm2  ;;  %vm69_vm6 = vweird.f32 %v52_v31 }
 0x102   :  { %v55_v33 = vmul.f32 %v99_v30, %v54_v32 }
 0x104   :  { %v56_v34 = vmul.f32 0.5, %v55_v33 }
 0x106   :  { %v57_v35 = vsub.f32 1.5, %v56_v34 }
 0x107   :  { %v101_v36 = vpop.eup %100 }
 0x108   :  { %v58_v37 = vmul.f32 %v99_v30, %v57_v35  ;;  %v64_v38 = vmul.f32 %v101_v36, %v52_v31  ;;  %vm70_vm5 = vweird.f32 %v101_v36 }
 0x109   :  { %vm71_vm7 = vmor %vm69_vm6, %vm70_vm5 }
 0x10a   :  { %v62_v40 = vsel %vm61_vm4, %v99_v30, %v58_v37  ;;  %v65_v41 = vmul.f32 %v101_v36, %v64_v38 }
 0x10b   :  { %v73_v43 = vmul.f32 %v62_v40, %v39_v17 }
 0x10c   :  { %v66_v44 = vmul.f32 0.5, %v65_v41 }
 0x10d   :  { %v79_v45 = vmul.f32 %v94_v39, %v73_v43 }
 0x10e   :  { %v67_v46 = vsub.f32 1.5, %v66_v44 }
 0x10f   :  { %v85_v47 = vadd.f32 %v95_v42, %v79_v45 }
 0x110   :  { %v68_v48 = vmul.f32 %v101_v36, %v67_v46 }
 0x111   :  { %87 = vst.msk [vmem:[%s162_s4] sm:$0xff] %vm23_vm0, %v85_v47 }
 0x112   :  { %v72_v49 = vsel %vm71_vm7, %v101_v36, %v68_v48 }
 0x113   :  { %v74_v50 = vmul.f32 %v72_v49, %v40_v22 }
 0x115   :  { %v80_v51 = vmul.f32 %v94_v39, %v74_v50 }
 0x117   :  { %v86_v52 = vadd.f32 %v95_v42, %v80_v51 }
 0x119   :  { %88 = vst.msk [vmem:[%s162_s4 + $0x8] sm:$0xff] %vm23_vm0, %v86_v52 }

// kernel: transformer_lm_forward.29
= control target key start
LH: loop header
LB: loop body
LE: loop exit
PB: predicated region body
PF: predicated region fallthrough
CT: control target
= control target key end

     0   :  { %vm19_vm0 = vcmask 261120   ;;  %v107_v1 = vmov 0.0   ;;  %vm82_vm1 = vcmask 257024   ;;  %s151_s1 = inlined_call_operand.vmem [shape: bf16[32,32], index: 1, kind: input, shape index: {}]   ;;  %s152_s2 = inlined_call_operand.vmem [shape: f32[1,32], index: 2, kind: input, shape index: {}]   ;;  %s153_s0 = inlined_call_operand.vmem [shape: bf16[16,32], index: 0, kind: input, shape index: {}]   ;;  %s154_s3 = inlined_call_operand.vmem [shape: bf16[16,32], index: 3, kind: output, shape index: {}]  }
   0x1   :  { %v104_v0 = vld [vmem:[%s151_s1 + $0x8] sm:$0xff]  ;;  %20 = vst.msk [vmem:[#allocation2] sm:$0xff] %vm19_vm0, %v107_v1  ;;  %v103_v2 = vld [vmem:[%s151_s1] sm:$0xff] }
   0x2   :  { %21 = vst.msk [vmem:[#allocation2 + $0x8] sm:$0xff] %vm19_vm0, %v107_v1  ;;  %57 = vmatpush.bf16.msra.mxu0 %v104_v0  ;;  %v102_v3 = vld [vmem:[%s153_s0] sm:$0xff] }
   0x3   :  { %v106_v8 = vld [vmem:[%s152_s2] ss:$0 sm:$0xff] }
   0x6   :  { %58 = vmatpush.bf16.msra.mxu0 %v103_v2 }
   0x8   :  { %v22_v4 = vld [vmem:[#allocation2] sm:$0xff] }
   0x9   :  { %101 = vmatmul.msk.bf16.vlgmr.msra.gmra.mxu0 %vm19_vm0, %v102_v3  ;;  %v23_v7 = vld [vmem:[#allocation2 + $0x8] sm:$0xff] }
  0x86   :  { %v60_v5 = vpop.f32.mrf.mxu0 }
  0x87   :  { %v65_v6 = vadd.f32 %v60_v5, %v22_v4 }
  0x89   :  { %67 = vst.msk [vmem:[#allocation2] sm:$0xff] %vm19_vm0, %v65_v6 }
  0x8e   :  { %v62_v9 = vpop.f32.mrf.mxu0 }
  0x8f   :  { %v66_v10 = vadd.f32 %v62_v9, %v23_v7 }
  0x90   :  { %v72_v11 = vld [vmem:[#allocation2] sm:$0xff] }
  0x91   :  { %v78_v12 = vadd.f32 %v106_v8, %v72_v11  ;;  %68 = vst.msk [vmem:[#allocation2 + $0x8] sm:$0xff] %vm19_vm0, %v66_v10 }
  0x93   :  { %v80_v13 = vpack.c.bf16 %v78_v12, %v78_v12 }
  0x95   :  { %83 = vst.msk [vmem:[%s154_s3] sm:$0xf] %vm82_vm1, %v80_v13 }
  0x98   :  { %v73_v14 = vld [vmem:[#allocation2 + $0x8] sm:$0xff] }
  0x99   :  { %v79_v15 = vadd.f32 %v106_v8, %v73_v14 }
  0x9b   :  { %v81_v16 = vpack.c.bf16 %v79_v15, %v79_v15 }
  0x9d   :  { %84 = vst.msk [vmem:[%s154_s3 + $0x4] sm:$0xf] %vm82_vm1, %v81_v16 }

// kernel: transformer_lm_forward.31
= control target key start
LH: loop header
LB: loop body
LE: loop exit
PB: predicated region body
PF: predicated region fallthrough
CT: control target
= control target key end

     0   :  { %s597_s12 = smov 0   ;;  %s646_s0 = inlined_call_operand.vmem [shape: bf16[2,4,8,8], index: 0, kind: input, shape index: {}]   ;;  %s647_s1 = inlined_call_operand.vmem [shape: bf16[2,4,8,8], index: 1, kind: input, shape index: {}]   ;;  %s648_s2 = inlined_call_operand.vmem [shape: bf16[2,4,8,8], index: 2, kind: input, shape index: {}]   ;;  %s649_s3 = inlined_call_operand.vmem [shape: bf16[2,4,8,8], index: 3, kind: output, shape index: {}]  }
   0x1 LB: > { %s518_s13 = sadd.s32 4294967295, %s575_s12   ;;  %p522_p0 = scmp.ge.s32.totalorder %s575_s12, 1  ;;  %s575_s12 = sphi %s597_s12, %s13_s12  }
   0x2   : > { %p157_p1 = scmp.lt.s32.totalorder %s575_s12, 3 }
   0x4   : > { %p158_p2 = pnand %p522_p0, %p157_p1 }
   0x5   : > { %p191_p3 = scmp.lt.s32.totalorder (!%p158_p2), %s518_s13, 1 }
   0x6   : > { %161 = sbr.rel (%p158_p2) target bundleno = 561 (0x231), region = 32 }
   0xb   : > { %s651_s13 = smov (!%p191_p3, %s518_s13), 1  ;;  %vm224_vm0 = vcmask 64512   ;;  %vm356_vm1 = vcmask 1043456   ;;  %vm434_vm2 = vcmask 60416  }
   0xc   : > { %s605_s14 = sshll.u32 %s651_s13, 4 }
   0xd   : > { %s200_s17 = scalar_lea.vmem %s647_s1, %s605_s14  ;;  %s195_s20 = scalar_lea.vmem %s646_s0, %s605_s14 }
   0xe   : > { %v216_v0 = vld [vmem:[%s200_s17] sm:$0xf]  ;;  %v218_v1 = vld [vmem:[%s200_s17 + $0x8] sm:$0xf]  ;;  %v219_v2 = vld [vmem:[%s200_s17 + $0xc] sm:$0xf]  ;;  %s205_s23 = scalar_lea.vmem %s648_s2, %s605_s14  ;;  %s210_s26 = scalar_lea.vmem %s649_s3, %s605_s14 }
   0xf   : > { %v229_v3 = vsel %vm224_vm0, %v216_v0, 0  ;;  %v267_v4 = vsel %vm224_vm0, %v218_v1, 0  ;;  %v286_v5 = vsel %vm224_vm0, %v219_v2, 0  ;;  %v217_v6 = vld [vmem:[%s200_s17 + $0x4] sm:$0xf] }
  0x10   : > { %238 = vmatpush.bf16.xpose.msra.mxu0 %v229_v3  ;;  %276 = vmatpush.bf16.xpose.msra.mxu2 %v267_v4  ;;  %v248_v7 = vsel %vm224_vm0, %v217_v6, 0  ;;  %v212_v8 = vld [vmem:[%s195_s20] sm:$0xf]  ;;  %v214_v9 = vld [vmem:[%s195_s20 + $0x8] sm:$0xf] }
  0x11   : > { %295 = vmatpush.bf16.xpose.msra.mxu3 %v286_v5  ;;  %257 = vmatpush.bf16.xpose.msra.mxu1 %v248_v7  ;;  %v215_v10 = vld [vmem:[%s195_s20 + $0xc] sm:$0xf]  ;;  %v213_v11 = vld [vmem:[%s195_s20 + $0x4] sm:$0xf]  ;;  %v220_v48 = vld [vmem:[%s205_s23] sm:$0xf] }
  0x12   : > { %v358_v49 = vsel %vm356_vm1, %v220_v48, 0  ;;  %v222_v50 = vld [vmem:[%s205_s23 + $0x8] sm:$0xf]  ;;  %v221_v52 = vld [vmem:[%s205_s23 + $0x4] sm:$0xf] }
  0x13   : > { %v396_v51 = vsel %vm356_vm1, %v222_v50, 0  ;;  %v377_v53 = vsel %vm356_vm1, %v221_v52, 0  ;;  %v223_v54 = vld [vmem:[%s205_s23 + $0xc] sm:$0xf] }
  0x14   : > { %v415_v55 = vsel %vm356_vm1, %v223_v54, 0 }
  0x17   : > { %531 = vmatmul.msk.bf16.vlgmr.msra.gmra.mxu0 %vm224_vm0, %v212_v8  ;;  %533 = vmatmul.msk.bf16.vlgmr.msra.gmra.mxu2 %vm224_vm0, %v214_v9 }
  0x18   : > { %534 = vmatmul.msk.bf16.vlgmr.msra.gmra.mxu3 %vm224_vm0, %v215_v10  ;;  %532 = vmatmul.msk.bf16.vlgmr.msra.gmra.mxu1 %vm224_vm0, %v213_v11 }
  0x19   : > { %367 = vmatpush.bf16.msrb.mxu0 %v358_v49  ;;  %405 = vmatpush.bf16.msrb.mxu2 %v396_v51 }
  0x1a   : > { %386 = vmatpush.bf16.msrb.mxu1 %v377_v53  ;;  %424 = vmatpush.bf16.msrb.mxu3 %v415_v55 }
  0x94   : > { %v240_v12 = vpop.f32.mrf.mxu0 }
  0x95   : > { %v301_v13 = vmul.f32 0.35355338, %v240_v12  ;;  %v259_v14 = vpop.f32.mrf.mxu1 }
  0x96   : > { %v302_v16 = vmul.f32 0.35355338, %v259_v14 }
  0x97   : > { %v305_v15 = vsel %vm224_vm0, %v301_v13, -inf }
  0x98   : > { %306 = vmax.xlane.f32.xlu1 %v305_v15  ;;  %v308_v22 = vsel %vm224_vm0, %v302_v16, -inf }
  0x9a   : > { %v278_v17 = vpop.f32.mrf.mxu2 }
  0x9b   : > { %v303_v18 = vmul.f32 0.35355338, %v278_v17  ;;  %v297_v19 = vpop.f32.mrf.mxu3 }
  0x9c   : > { %v242_v20 = vpop.f32.mrf.mxu0  ;;  %v304_v24 = vmul.f32 0.35355338, %v297_v19 }
  0x9d   : > { %v311_v21 = vsel %vm224_vm0, %v303_v18, -inf  ;;  %v261_v23 = vpop.f32.mrf.mxu1 }
  0x9e   : > { %312 = vmax.xlane.f32.xlu0 %v311_v21  ;;  %v314_v27 = vsel %vm224_vm0, %v304_v24, -inf }
  0xa0   : > { %309 = vmax.xlane.f32.xlu1 %v308_v22 }
  0xa2   : > { %v280_v25 = vpop.f32.mrf.mxu2 }
  0xa3   : > { %v299_v26 = vpop.f32.mrf.mxu3 }
  0xa6   : > { %315 = vmax.xlane.f32.xlu0 %v314_v27 }
 0x10b   : > { %v307_v28 = vpop.xlane.xlu1 %306 }
 0x10c   : > { %v317_v29 = vsub.f32 %v301_v13, %v307_v28 }
 0x10e   : > { %v321_v30 = vmul.f32 1.442695, %v317_v29 }
 0x110   : > { %553 = vpow2.f32 %v321_v30 }
 0x111   : > { %v313_v31 = vpop.xlane.xlu0 %312 }
 0x112   : > { %v319_v32 = vsub.f32 %v303_v18, %v313_v31 }
 0x113   : > { %v310_v33 = vpop.xlane.xlu1 %309 }
 0x114   : > { %v325_v34 = vmul.f32 1.442695, %v319_v32  ;;  %v318_v35 = vsub.f32 %v302_v16, %v310_v33 }
 0x116   : > { %v554_v36 = vpop.eup %553  ;;  %555 = vpow2.f32 %v325_v34  ;;  %v323_v37 = vmul.f32 1.442695, %v318_v35 }
 0x117   : > { %v329_v38 = vsel %vm224_vm0, %v554_v36, 0.0 }
 0x118   : > { %557 = vpow2.f32 %v323_v37  ;;  %330 = vadd.xlane.f32.xlu0 %v329_v38 }
 0x119   : > { %v316_v39 = vpop.xlane.xlu0 %315 }
 0x11a   : > { %v320_v40 = vsub.f32 %v304_v24, %v316_v39 }
 0x11c   : > { %v556_v41 = vpop.eup %555  ;;  %v327_v42 = vmul.f32 1.442695, %v320_v40 }
 0x11d   : > { %v335_v43 = vsel %vm224_vm0, %v556_v41, 0.0 }
 0x11e   : > { %v558_v44 = vpop.eup %557  ;;  %559 = vpow2.f32 %v327_v42  ;;  %336 = vadd.xlane.f32.xlu2 %v335_v43 }
 0x11f   : > { %v332_v45 = vsel %vm224_vm0, %v558_v44, 0.0 }
 0x120   : > { %333 = vadd.xlane.f32.xlu1 %v332_v45 }
 0x124   : > { %v560_v46 = vpop.eup %559 }
 0x125   : > { %v338_v47 = vsel %vm224_vm0, %v560_v46, 0.0 }
 0x126   : > { %339 = vadd.xlane.f32.xlu2 %v338_v47 }
 0x18b   : > { %v331_v56 = vpop.xlane.xlu0 %330 }
 0x18c   : > { %561 = vrcp.f32 %v331_v56 }
 0x191   : > { %v337_v57 = vpop.xlane.xlu2 %336 }
 0x192   : > { %v562_v58 = vpop.eup %561  ;;  %563 = vrcp.f32 %v337_v57 }
 0x193   : > { %v345_v59 = vmul.f32 %v562_v58, %v554_v36  ;;  %v334_v60 = vpop.xlane.xlu1 %333 }
 0x194   : > { %565 = vrcp.f32 %v334_v60 }
 0x195   : > { %v349_v61 = vpack.c.bf16 %v345_v59, %v345_v59 }
 0x197   : > { %535 = vmatmul.msk.bf16.vlgmr.msrb.gmra.mxu0 %vm224_vm0, %v349_v61 }
 0x198   : > { %v564_v62 = vpop.eup %563 }
 0x199   : > { %v347_v63 = vmul.f32 %v564_v62, %v556_v41  ;;  %v340_v0 = vpop.xlane.xlu2 %339 }
 0x19a   : > { %v566_v1 = vpop.eup %565  ;;  %567 = vrcp.f32 %v340_v0 }
 0x19b   : > { %v346_v2 = vmul.f32 %v566_v1, %v558_v44  ;;  %v351_v3 = vpack.c.bf16 %v347_v63, %v347_v63 }
 0x19d   : > { %v350_v4 = vpack.c.bf16 %v346_v2, %v346_v2  ;;  %537 = vmatmul.msk.bf16.vlgmr.msrb.gmra.mxu2 %vm224_vm0, %v351_v3 }
 0x19f   : > { %536 = vmatmul.msk.bf16.vlgmr.msrb.gmra.mxu1 %vm224_vm0, %v350_v4 }
 0x1a0   : > { %v568_v5 = vpop.eup %567 }
 0x1a1   : > { %v348_v6 = vmul.f32 %v568_v5, %v560_v46 }
 0x1a3   : > { %v352_v7 = vpack.c.bf16 %v348_v6, %v348_v6 }
 0x1a5   : > { %538 = vmatmul.msk.bf16.vlgmr.msrb.gmra.mxu3 %vm224_vm0, %v352_v7 }
 0x214   : > { %v369_v8 = vpop.f32.mrf.mxu0 }
 0x215   : > { %v430_v9 = vpack.c.bf16 %v369_v8, %v369_v8 }
 0x217   : > { %435 = vst.msk [vmem:[%s210_s26] sm:$0xf] %vm434_vm2, %v430_v9 }
 0x21c   : > { %v371_v10 = vpop.f32.mrf.mxu0  ;;  %v388_v11 = vpop.f32.mrf.mxu1 }
 0x21d   : > { %v431_v12 = vpack.c.bf16 %v388_v11, %v388_v11 }
 0x21f   : > { %436 = vst.msk [vmem:[%s210_s26 + $0x4] sm:$0xf] %vm434_vm2, %v431_v12 }
 0x220   : > { %v407_v13 = vpop.f32.mrf.mxu2 }
 0x221   : > { %v432_v14 = vpack.c.bf16 %v407_v13, %v407_v13 }
 0x223   : > { %437 = vst.msk [vmem:[%s210_s26 + $0x8] sm:$0xf] %vm434_vm2, %v432_v14 }
 0x224   : > { %v390_v15 = vpop.f32.mrf.mxu1 }
 0x228   : > { %v409_v16 = vpop.f32.mrf.mxu2  ;;  %v426_v17 = vpop.f32.mrf.mxu3 }
 0x229   : > { %v433_v18 = vpack.c.bf16 %v426_v17, %v426_v17 }
 0x22b   : > { %438 = vst.msk [vmem:[%s210_s26 + $0xc] sm:$0xf] %vm434_vm2, %v433_v18 }
 0x230   : > { %v428_v19 = vpop.f32.mrf.mxu3 }
 0x231 PF: > { %s13_s12 = sadd.s32 1, %s575_s12  }
 0x232   : > { %p10_p4 = scmp.ge.s32.totalorder %s13_s12, 4  }
 0x234   :  { %12 = sbr.rel (!%p10_p4) target bundleno = 1 (0x1), region = 68 }

// kernel: transformer_lm_forward.34
= control target key start
LH: loop header
LB: loop body
LE: loop exit
PB: predicated region body
PF: predicated region fallthrough
CT: control target
= control target key end

     0   :  { %s783_s12 = smov 0   ;;  %s785_s13 = smov 0   ;;  %s876_s0 = inlined_call_operand.vmem [shape: bf16[16,32], index: 0, kind: input, shape index: {}]   ;;  %s877_s1 = inlined_call_operand.vmem [shape: bf16[32,2048], index: 1, kind: input, shape index: {}]   ;;  %s878_s2 = inlined_call_operand.vmem [shape: f32[1,2048], index: 2, kind: input, shape index: {}]   ;;  %s879_s3 = inlined_call_operand.vmem [shape: bf16[16,2048], index: 3, kind: output, shape index: {}]  }
   0x1   :  { %s787_s14 = smov 0   ;;  %s789_s15 = smov 0  }
   0x2   :  { %s791_s16 = smov 0  }
   0x3 LB: > { %s28_s17 = sadd.s32 1, %s757_s15  ;;  %s615_s18 = sadd.s32 4294967295, %s761_s16   ;;  %s761_s16 = sphi %s791_s16, %s13_s16   ;;  %s757_s15 = sphi %s789_s15, %s884_s15   ;;  %s753_s14 = sphi %s787_s14, %s883_s14   ;;  %s749_s13 = sphi %s785_s13, %s882_s13   ;;  %s745_s12 = sphi %s783_s12, %s881_s12  }
   0x4   : > { %p30_p0 = scmp.ge.s32.totalorder %s28_s17, 4  ;;  %p76_p1 = scmp.ne.s32.totalorder %s749_s13, %s745_s12 }
   0x5   : > { %p77_p2 = scmp.eq.s32.totalorder %s761_s16, 0  ;;  %p134_p4 = scmp.eq.s32.totalorder %s615_s18, 3 }
   0x6   : > { %s886_s17 = smov (%p30_p0, %s28_s17), 0  ;;  %s69_s20 = sadd.s32 1, %s749_s13 }
   0x7   : > { %p78_p3 = por %p77_p2, %p76_p1  ;;  %s65_s19 = ssub.s32 %s757_s15, %s886_s17 }
   0x8   : > { %p67_p5 = scmp.eq.s32.totalorder %s65_s19, 0  ;;  %p818_p6 = por %p134_p4, %p76_p1 }
   0x9   : > { %p619_p7 = scmp.ge.s32.totalorder %s761_s16, 4 }
   0xa   : > { %s823_s22 = scalar_select %p67_p5, %s749_s13, %s69_s20  }
   0xb   : > { %168 = sbr.rel (%p619_p7) target bundleno = 28 (0x1c), region = 20 }
  0x10   : > { %171 = sbr.rel (!%p78_p3) target bundleno = 28 (0x1c), region = 24  ;;  %s173_s23 = sand.u32 (%p78_p3), 1, %s749_s13  }
  0x11   : > { %s672_s24 = sshll.u32 (%p78_p3), %s757_s15, 4  ;;  %s620_s25 = sshll.u32 (%p78_p3), %s173_s23, 6 }
  0x12   : > { %s181_s28 = scalar_lea.vmem (%p78_p3), %s877_s1, %s672_s24  ;;  %s175_s29 = scalar_lea.vmem (%p78_p3), [#allocation3], %s620_s25 }
  0x13   : > { %v194_v0 = vld [vmem:[%s181_s28] sm:$0xff] (%p78_p3)  ;;  %v196_v1 = vld [vmem:[%s181_s28 + $0x8] sm:$0xff] (%p78_p3) }
  0x14   : > { %v198_v2 = vld [vmem:[%s181_s28 + $0x40] sm:$0xff] (%p78_p3)  ;;  %195 = vst [vmem:[%s175_s29] sm:$0xff] (%p78_p3), %v194_v0  ;;  %v200_v3 = vld [vmem:[%s181_s28 + $0x48] sm:$0xff] (%p78_p3) }
  0x15   : > { %197 = vst [vmem:[%s175_s29 + $0x8] sm:$0xff] %v196_v1  ;;  %v202_v4 = vld [vmem:[%s181_s28 + $0x80] sm:$0xff]  ;;  %v204_v5 = vld [vmem:[%s181_s28 + $0x88] sm:$0xff] }
  0x16   : > { %199 = vst [vmem:[%s175_s29 + $0x10] sm:$0xff] %v198_v2  ;;  %v206_v6 = vld [vmem:[%s181_s28 + $0xc0] sm:$0xff]  ;;  %v208_v7 = vld [vmem:[%s181_s28 + $0xc8] sm:$0xff] }
  0x17   : > { %201 = vst [vmem:[%s175_s29 + $0x18] sm:$0xff] %v200_v3 }
  0x18   : > { %203 = vst [vmem:[%s175_s29 + $0x20] sm:$0xff] %v202_v4 }
  0x19   : > { %205 = vst [vmem:[%s175_s29 + $0x28] sm:$0xff] %v204_v5 }
  0x1a   : > { %207 = vst [vmem:[%s175_s29 + $0x30] sm:$0xff] %v206_v6 }
  0x1b   : > { %209 = vst [vmem:[%s175_s29 + $0x38] sm:$0xff] %v208_v7 }
  0x1c PF: > { %p623_p8 = scmp.ge.s32.totalorder %s761_s16, 1  ;;  %p222_p9 = scmp.lt.s32.totalorder %s761_s16, 5 }
  0x1e   : > { %p223_p10 = pnand %p623_p8, %p222_p9 }
  0x1f   : > { %s229_s30 = sand.u32 (!%p223_p10), 1, %s745_s12   ;;  %s626_s8 = sshll.u32 (!%p223_p10), %s753_s14, 2 }
  0x20   : > { %226 = sbr.rel (%p223_p10) target bundleno = 204 (0xcc), region = 51  ;;  %s624_s4 = sshll.u32 (!%p223_p10), %s229_s30, 6 }
  0x21   : > { %s231_s5 = scalar_lea.vmem (!%p223_p10), [#allocation3], %s624_s4  ;;  %p275_p11 = scmp.lt.s32.totalorder (!%p223_p10), %s626_s8, 15 }
  0x22   : > { %s625_s18 = sshll.u32 (!%p223_p10), %s229_s30, 5 }
  0x23   : > { %s845_s19 = scalar_lea.vmem (!%p223_p10), [#allocation4], %s625_s18 }
  0x25   : > { %v649_v8 = vld [vmem:[%s231_s5 + $0x20] sm:$0xf]  ;;  %v680_v9 = vld [vmem:[%s231_s5 + $0x2c] sm:$0xf0]  ;;  %v678_v10 = vld [vmem:[%s231_s5 + $0x24] sm:$0xf] }
  0x26   : > { %v650_v11 = vor.u32 %v680_v9, %v649_v8  ;;  %v651_v12 = vld [vmem:[%s231_s5 + $0x30] sm:$0xf0]  ;;  %v657_v13 = vld [vmem:[%s231_s5 + $0x28] sm:$0xf]  ;;  %v681_v14 = vld [vmem:[%s231_s5 + $0x34] sm:$0xf0] }
  0x27   : > { %v654_v15 = vor.u32 %v678_v10, %v651_v12  ;;  %v658_v16 = vor.u32 %v681_v14, %v657_v13  ;;  %v679_v17 = vld [vmem:[%s231_s5 + $0x2c] sm:$0xf]  ;;  %v659_v18 = vld [vmem:[%s231_s5 + $0x38] sm:$0xf0]  ;;  %v633_v19 = vld [vmem:[%s231_s5] sm:$0xf] }
  0x28   : > { %367 = vmatpush.bf16.msra.mxu0 %v650_v11  ;;  %v662_v20 = vor.u32 %v679_v17, %v659_v18  ;;  %v676_v21 = vld [vmem:[%s231_s5 + $0xc] sm:$0xf0]  ;;  %v674_v22 = vld [vmem:[%s231_s5 + $0x4] sm:$0xf]  ;;  %v635_v23 = vld [vmem:[%s231_s5 + $0x10] sm:$0xf0] }
  0x29   : > { %381 = vmatpush.bf16.msra.mxu1 %v654_v15  ;;  %395 = vmatpush.bf16.msra.mxu2 %v658_v16  ;;  %v634_v24 = vor.u32 %v676_v21, %v633_v19  ;;  %v638_v25 = vor.u32 %v674_v22, %v635_v23  ;;  %v641_v26 = vld [vmem:[%s231_s5 + $0x8] sm:$0xf]  ;;  %v677_v27 = vld [vmem:[%s231_s5 + $0x14] sm:$0xf0]  ;;  %v675_v28 = vld [vmem:[%s231_s5 + $0xc] sm:$0xf] }
  0x2a   : > { %409 = vmatpush.bf16.msra.mxu3 %v662_v20  ;;  %v642_v29 = vor.u32 %v677_v27, %v641_v26  ;;  %v643_v30 = vld [vmem:[%s231_s5 + $0x18] sm:$0xf0]  ;;  %v673_v32 = vld [vmem:[%s876_s0] sm:$0xff]  ;;  %vm357_vm0 = vcmask 261120   ;;  %s888_s8 = smov (!%p275_p11, %s626_s8), 15  ;;  %s682_s12 = sshll.u32 (%p818_p6), %s753_s14, 4 }
  0x2b   : > { %v646_v31 = vor.u32 %v675_v28, %v643_v30  ;;  %s277_s11 = scalar_lea.vmem %s878_s2, %s888_s8  ;;  %s490_s24 = scalar_lea.vmem (%p818_p6), %s879_s3, %s682_s12 }
  0x2c   : > { %368 = vmatpush.bf16.msra.mxu0 %v634_v24  ;;  %v444_v33 = vld [vmem:[%s277_s11] sm:$0xf] }
  0x2d   : > { %382 = vmatpush.bf16.msra.mxu1 %v638_v25  ;;  %396 = vmatpush.bf16.msra.mxu2 %v642_v29  ;;  %v446_v34 = vperm.slane %v444_v33, 0  ;;  %v447_v35 = vperm.slane %v444_v33, 1  ;;  %v448_v42 = vperm.slane %v444_v33, 2  ;;  %v449_v43 = vperm.slane %v444_v33, 3 }
  0x2e   : > { %410 = vmatpush.bf16.msra.mxu3 %v646_v31 }
  0x2f   : > { %663 = vmatmul.msk.bf16.vlgmr.msra.gmra.mxu0 %vm357_vm0, %v673_v32 }
  0x30   : > { %664 = vmatmul.msk.bf16.vlgmr.msra.gmra.mxu1 %vm357_vm0, %v673_v32  ;;  %665 = vmatmul.msk.bf16.vlgmr.msra.gmra.mxu2 %vm357_vm0, %v673_v32 }
  0x31   : > { %666 = vmatmul.msk.bf16.vlgmr.msra.gmra.mxu3 %vm357_vm0, %v673_v32 }
  0xac   : > { %v370_v36 = vpop.f32.mrf.mxu0 }
  0xad   : > { %v454_v37 = vadd.f32 %v446_v34, %v370_v36  ;;  %v384_v38 = vpop.f32.mrf.mxu1 }
  0xae   : > { %v455_v39 = vadd.f32 %v447_v35, %v384_v38 }
  0xaf   : > { %v462_v40 = vmax.f32 %v454_v37, 0.0 }
  0xb0   : > { %v463_v41 = vmax.f32 %v455_v39, 0.0 }
  0xb2   : > { %v470_v44 = vpack.c.bf16 %v463_v41, %v462_v40 }
  0xb3   : > { %v398_v45 = vpop.f32.mrf.mxu2 }
  0xb4   : > { %474 = vst [vmem:[%s845_s19] sm:$0xff] %v470_v44  ;;  %v456_v46 = vadd.f32 %v448_v42, %v398_v45  ;;  %v412_v47 = vpop.f32.mrf.mxu3  ;;  %v372_v48 = vpop.f32.mrf.mxu0 }
  0xb5   : > { %v457_v49 = vadd.f32 %v449_v43, %v412_v47  ;;  %v458_v50 = vadd.f32 %v446_v34, %v372_v48  ;;  %v386_v51 = vpop.f32.mrf.mxu1 }
  0xb6   : > { %v464_v52 = vmax.f32 %v456_v46, 0.0  ;;  %v459_v53 = vadd.f32 %v447_v35, %v386_v51 }
  0xb7   : > { %v465_v54 = vmax.f32 %v457_v49, 0.0  ;;  %v466_v55 = vmax.f32 %v458_v50, 0.0 }
  0xb8   : > { %v467_v56 = vmax.f32 %v459_v53, 0.0 }
  0xb9   : > { %v471_v57 = vpack.c.bf16 %v465_v54, %v464_v52 }
  0xba   : > { %v472_v58 = vpack.c.bf16 %v467_v56, %v466_v55 }
  0xbb   : > { %475 = vst [vmem:[%s845_s19 + $0x8] sm:$0xff] %v471_v57  ;;  %v400_v59 = vpop.f32.mrf.mxu2  ;;  %v503_v2 = vld [vmem:[%s845_s19] sm:$0xff] (%p818_p6) }
  0xbc   : > { %476 = vst [vmem:[%s845_s19 + $0x10] sm:$0xff] %v472_v58  ;;  %v460_v60 = vadd.f32 %v448_v42, %v400_v59  ;;  %v414_v61 = vpop.f32.mrf.mxu3 }
  0xbd   : > { %v461_v62 = vadd.f32 %v449_v43, %v414_v61  ;;  %504 = vst [vmem:[%s490_s24] sm:$0xff] (%p818_p6), %v503_v2 }
  0xbe   : > { %v468_v63 = vmax.f32 %v460_v60, 0.0 }
  0xbf   : > { %v469_v0 = vmax.f32 %v461_v62, 0.0  ;;  %484 = sbr.rel (!%p818_p6) target bundleno = 204 (0xcc), region = 67 }
  0xc1   : > { %v473_v1 = vpack.c.bf16 %v469_v0, %v468_v63 }
  0xc2   : > { %v505_v3 = vld [vmem:[%s845_s19 + $0x8] sm:$0xff] (%p818_p6) }
  0xc3   : > { %477 = vst [vmem:[%s845_s19 + $0x18] sm:$0xff] %v473_v1  ;;  %v507_v4 = vld [vmem:[%s845_s19 + $0x10] sm:$0xff] (%p818_p6) }
  0xc4   : > { %506 = vst [vmem:[%s490_s24 + $0x8] sm:$0xff] %v505_v3 }
  0xc5   : > { %508 = vst [vmem:[%s490_s24 + $0x40] sm:$0xff] %v507_v4 }
  0xca   : > { %v509_v5 = vld [vmem:[%s845_s19 + $0x18] sm:$0xff] }
  0xcb   : > { %510 = vst [vmem:[%s490_s24 + $0x48] sm:$0xff] %v509_v5 }
  0xcc PF: > { %s13_s16 = sadd.s32 1, %s761_s16   ;;  %s881_s12 = smov %s749_s13 }
  0xcd   : > { %p10_p12 = scmp.ge.s32.totalorder %s13_s16, 6   ;;  %s882_s13 = smov %s823_s22 }
  0xce   : > { %s883_s14 = smov %s757_s15  ;;  %s884_s15 = smov %s886_s17 }
  0xcf   :  { %12 = sbr.rel (!%p10_p12) target bundleno = 3 (0x3), region = 127 }

// kernel: transformer_lm_forward.30
= control target key start
LH: loop header
LB: loop body
LE: loop exit
PB: predicated region body
PF: predicated region fallthrough
CT: control target
= control target key end

     0   :  { %vm19_vm0 = vcmask 523264   ;;  %v108_v1 = vmov 0.0   ;;  %vm47_vm1 = vcmask 261120   ;;  %vm83_vm2 = vcmask 519168   ;;  %s151_s1 = inlined_call_operand.vmem [shape: bf16[32,64], index: 1, kind: input, shape index: {}]   ;;  %s152_s2 = inlined_call_operand.vmem [shape: f32[1,64], index: 2, kind: input, shape index: {}]   ;;  %s153_s0 = inlined_call_operand.vmem [shape: bf16[16,32], index: 0, kind: input, shape index: {}]   ;;  %s154_s3 = inlined_call_operand.vmem [shape: bf16[16,64], index: 3, kind: output, shape index: {}]  }
   0x1   :  { %v105_v0 = vld [vmem:[%s151_s1 + $0x8] sm:$0xff]  ;;  %20 = vst.msk [vmem:[#allocation2] sm:$0xff] %vm19_vm0, %v108_v1  ;;  %v104_v2 = vld [vmem:[%s151_s1] sm:$0xff] }
   0x2   :  { %21 = vst.msk [vmem:[#allocation2 + $0x8] sm:$0xff] %vm19_vm0, %v108_v1  ;;  %57 = vmatpush.bf16.msra.mxu0 %v105_v0  ;;  %v103_v3 = vld [vmem:[%s153_s0] sm:$0xff] }
   0x3   :  { %v107_v8 = vld [vmem:[%s152_s2] ss:$0 sm:$0xff] }
   0x6   :  { %58 = vmatpush.bf16.msra.mxu0 %v104_v2 }
   0x8   :  { %v22_v4 = vld [vmem:[#allocation2] sm:$0xff] }
   0x9   :  { %102 = vmatmul.msk.bf16.vlgmr.msra.gmra.mxu0 %vm47_vm1, %v103_v3  ;;  %v23_v7 = vld [vmem:[#allocation2 + $0x8] sm:$0xff] }
  0x86   :  { %v60_v5 = vpop.f32.mrf.mxu0 }
  0x87   :  { %v65_v6 = vadd.f32 %v60_v5, %v22_v4 }
  0x89   :  { %68 = vst.msk [vmem:[#allocation2] sm:$0xff] %vm19_vm0, %v65_v6 }
  0x8e   :  { %v62_v9 = vpop.f32.mrf.mxu0 }
  0x8f   :  { %v66_v10 = vadd.f32 %v62_v9, %v23_v7 }
  0x90   :  { %v73_v11 = vld [vmem:[#allocation2] sm:$0xff] }
  0x91   :  { %v79_v12 = vadd.f32 %v107_v8, %v73_v11  ;;  %69 = vst.msk [vmem:[#allocation2 + $0x8] sm:$0xff] %vm19_vm0, %v66_v10 }
  0x93   :  { %v81_v13 = vpack.c.bf16 %v79_v12, %v79_v12 }
  0x95   :  { %84 = vst.msk [vmem:[%s154_s3] sm:$0xf] %vm83_vm2, %v81_v13 }
  0x98   :  { %v74_v14 = vld [vmem:[#allocation2 + $0x8] sm:$0xff] }
  0x99   :  { %v80_v15 = vadd.f32 %v107_v8, %v74_v14 }
  0x9b   :  { %v82_v16 = vpack.c.bf16 %v80_v15, %v80_v15 }
  0x9d   :  { %85 = vst.msk [vmem:[%s154_s3 + $0x4] sm:$0xf] %vm83_vm2, %v82_v16 }

// kernel: transformer_lm_forward.49
= control target key start
LH: loop header
LB: loop body
LE: loop exit
PB: predicated region body
PF: predicated region fallthrough
CT: control target
= control target key end

     0   :  { %vm20_vm0 = vcmask 130048   ;;  %v149_v1 = vmov 0.0   ;;  %s194_s0 = inlined_call_operand.vmem [shape: bf16[16,32], index: 0, kind: input, shape index: {}]   ;;  %s195_s1 = inlined_call_operand.vmem [shape: bf16[32,16], index: 1, kind: input, shape index: {}]   ;;  %s196_s2 = inlined_call_operand.vmem [shape: f32[1,16], index: 2, kind: input, shape index: {}]   ;;  %s197_s3 = inlined_call_operand.hbm [shape: f32[16,16], index: 3, kind: output, shape index: {}]  }
   0x1   :  { %v117_v0 = vld [vmem:[%s195_s1 + $0x8] sm:$0xff]  ;;  %21 = vst.msk [vmem:[#allocation2] sm:$0xff] %vm20_vm0, %v149_v1 }
   0x2   :  { %8 = vsyncpa [#allocation4], 0  ;;  %58 = vmatpush.bf16.msra.mxu0 %v117_v0  ;;  %v116_v2 = vld [vmem:[%s195_s1] sm:$0xff]  ;;  %22 = vst.msk [vmem:[#allocation2 + $0x8] sm:$0xff] %vm20_vm0, %v149_v1  ;;  %vm48_vm1 = vcmask 261120   ;;  %s90_s22 = sshll.u32 %s197_s3, 4  ;;  %s91_s22 = int_to_ptr.hbm [resolvable:$true] %s90_s22 }
   0x3   :  { %v115_v3 = vld [vmem:[%s194_s0] sm:$0xff]  ;;  %s150_s0 = smov [#allocation3]   ;;  %s152_s23 = smov 8  }
   0x4   :  { %v122_v8 = vld [vmem:[%s196_s2] ss:$0 sm:$0xff]  ;;  %s88_s1 = sshll.u32 %s150_s0, 4  ;;  %s151_s2 = smov 128   ;;  %s89_s1 = int_to_ptr.vmem [resolvable:$true] %s88_s1 }
   0x6   :  { %59 = vmatpush.bf16.msra.mxu0 %v116_v2 }
   0x8   :  { %v23_v4 = vld [vmem:[#allocation2] sm:$0xff] }
   0x9   :  { %114 = vmatmul.msk.bf16.vlgmr.msra.gmra.mxu0 %vm48_vm1, %v115_v3  ;;  %v24_v7 = vld [vmem:[#allocation2 + $0x8] sm:$0xff] }
  0x86   :  { %v61_v5 = vpop.f32.mrf.mxu0 }
  0x87   :  { %v66_v6 = vadd.f32 %v61_v5, %v23_v4 }
  0x89   :  { %69 = vst.msk [vmem:[#allocation2] sm:$0xff] %vm20_vm0, %v66_v6 }
  0x8e   :  { %v63_v9 = vpop.f32.mrf.mxu0 }
  0x8f   :  { %v67_v10 = vadd.f32 %v63_v9, %v24_v7 }
  0x90   :  { %v74_v11 = vld [vmem:[#allocation2] sm:$0xff] }
  0x91   :  { %70 = vst.msk [vmem:[#allocation2 + $0x8] sm:$0xff] %vm20_vm0, %v67_v10  ;;  %v80_v12 = vadd.f32 %v122_v8, %v74_v11 }
  0x93   :  { %82 = vst.msk [vmem:[#allocation3] sm:$0xff] %vm20_vm0, %v80_v12 }
  0x98   :  { %v75_v13 = vld [vmem:[#allocation2 + $0x8] sm:$0xff] }
  0x99   :  { %v81_v14 = vadd.f32 %v122_v8, %v75_v13 }
  0x9b   :  { %83 = vst.msk [vmem:[#allocation3 + $0x8] sm:$0xff] %vm20_vm0, %v81_v14 }
  0x9c   :  { %96 = dma.vmem_to_hbm [thread:$0]  %s89_s1, 256, %s91_s22, [#allocation4], %s151_s2, %s151_s2, %s152_s23  }
  0x9d   :  { %147 = dma.done.wait [#allocation4], 256  }
  0x9e   :  { %148 = vsyncadd [#allocation4], 4294967040 }
  0x9f   :  { %101 = vsyncpa [#allocation4], 1 }

// kernel: transformer_lm_forward.35
= control target key start
LH: loop header
LB: loop body
LE: loop exit
PB: predicated region body
PF: predicated region fallthrough
CT: control target
= control target key end

     0   :  { %s1055_s12 = smov 0   ;;  %s1057_s13 = smov 0   ;;  %s1179_s0 = inlined_call_operand.vmem [shape: bf16[16,2048], index: 0, kind: input, shape index: {}]   ;;  %s1180_s1 = inlined_call_operand.vmem [shape: bf16[2048,32], index: 1, kind: input, shape index: {}]   ;;  %s1181_s2 = inlined_call_operand.vmem [shape: f32[1,32], index: 2, kind: input, shape index: {}]   ;;  %s1182_s3 = inlined_call_operand.vmem [shape: f32[16,32], index: 3, kind: output, shape index: {}]  }
   0x1   :  { %s1059_s14 = smov 0   ;;  %s1061_s15 = smov 0  }
   0x2   :  { %s1063_s16 = smov 0  }
   0x3 LB: > { %s25_s17 = sadd.s32 1, %s1028_s15  ;;  %p48_p1 = scmp.ne.s32.totalorder %s1020_s13, %s1016_s12  ;;  %s1032_s16 = sphi %s1063_s16, %s13_s16   ;;  %s1028_s15 = sphi %s1061_s15, %s1186_s15   ;;  %s1024_s14 = sphi %s1059_s14, %s1185_s14   ;;  %s1020_s13 = sphi %s1057_s13, %s1184_s13   ;;  %s1016_s12 = sphi %s1055_s12, %s1183_s12  }
   0x4   : > { %p26_p0 = scmp.ge.s32.totalorder %s25_s17, 4  ;;  %p49_p2 = scmp.eq.s32.totalorder %s1032_s16, 0 }
   0x5   : > { %s41_s19 = sadd.s32 1, %s1020_s13  ;;  %p757_p5 = scmp.ge.s32.totalorder %s1032_s16, 4 }
   0x6   : > { %s1188_s17 = smov (%p26_p0, %s25_s17), 0  ;;  %p50_p3 = por %p49_p2, %p48_p1 }
   0x7   : > { %s37_s18 = ssub.s32 %s1028_s15, %s1188_s17  ;;  %162 = sbr.rel (%p757_p5) target bundleno = 20 (0x14), region = 20 }
   0x8   : > { %p39_p4 = scmp.eq.s32.totalorder %s37_s18, 0 }
   0xa   : > { %s1090_s20 = scalar_select %p39_p4, %s1020_s13, %s41_s19  }
   0xc   : > { %165 = sbr.rel (!%p50_p3) target bundleno = 20 (0x14), region = 24  ;;  %s167_s21 = sand.u32 (%p50_p3), 1, %s1020_s13  }
   0xd   : > { %s915_s22 = sshll.u32 (%p50_p3), %s1028_s15, 4  ;;  %s758_s23 = sshll.u32 (%p50_p3), %s167_s21, 5 }
   0xe   : > { %s175_s26 = scalar_lea.vmem (%p50_p3), %s1179_s0, %s915_s22  ;;  %s169_s27 = scalar_lea.vmem (%p50_p3), [#allocation3], %s758_s23 }
   0xf   : > { %v188_v0 = vld [vmem:[%s175_s26] sm:$0xff] (%p50_p3)  ;;  %v190_v1 = vld [vmem:[%s175_s26 + $0x8] sm:$0xff] (%p50_p3) }
  0x10   : > { %v192_v2 = vld [vmem:[%s175_s26 + $0x40] sm:$0xff] (%p50_p3)  ;;  %189 = vst [vmem:[%s169_s27] sm:$0xff] (%p50_p3), %v188_v0  ;;  %v194_v3 = vld [vmem:[%s175_s26 + $0x48] sm:$0xff] (%p50_p3) }
  0x11   : > { %191 = vst [vmem:[%s169_s27 + $0x8] sm:$0xff] %v190_v1 }
  0x12   : > { %193 = vst [vmem:[%s169_s27 + $0x10] sm:$0xff] %v192_v2 }
  0x13   : > { %195 = vst [vmem:[%s169_s27 + $0x18] sm:$0xff] %v194_v3 }
  0x14 PF: > { %p761_p6 = scmp.ge.s32.totalorder %s1032_s16, 1  ;;  %p212_p7 = scmp.lt.s32.totalorder %s1032_s16, 5 }
  0x16   : > { %p213_p8 = pnand %p761_p6, %p212_p7 }
  0x17   : > { %s219_s28 = sand.u32 (!%p213_p8), 1, %s1016_s12   ;;  %s763_s29 = sshll.u32 (!%p213_p8), %s1024_s14, 6 }
  0x18   : > { %216 = sbr.rel (%p213_p8) target bundleno = 228 (0xe4), region = 51  ;;  %s762_s30 = sshll.u32 (!%p213_p8), %s219_s28, 5 }
  0x19   : > { %p259_p9 = scmp.lt.s32.totalorder (!%p213_p8), %s763_s29, 255  ;;  %s1107_s8 = scalar_lea.vmem (!%p213_p8), [#allocation3], %s762_s30 }
  0x1a   : > { %p765_p10 = scmp.ne.s32.totalorder (!%p213_p8), %s1024_s14, 0 }
  0x1d   : > { %s1190_s29 = smov (!%p259_p9, %s763_s29), 255  ;;  %282 = sbr.rel (%p765_p10) target bundleno = 37 (0x25), region = 59 }
  0x1e   : > { %s764_s4 = sshll.u32 %s1190_s29, 2 }
  0x1f   : > { %s1105_s7 = scalar_lea.vmem %s1180_s1, %s764_s4 }
  0x22   : > { %vm283_vm0 = vcmask 261120   ;;  %v1034_v4 = vmov 0.0  }
  0x23   : > { %284 = vst.msk [vmem:[#allocation2] sm:$0xff] %vm283_vm0, %v1034_v4 }
  0x24   : > { %285 = vst.msk [vmem:[#allocation2 + $0x8] sm:$0xff] %vm283_vm0, %v1034_v4 }
  0x25 PF: > { %v927_v5 = vld [vmem:[%s1105_s7 + $0x38] sm:$0xff]  ;;  %v926_v9 = vld [vmem:[%s1105_s7 + $0x30] sm:$0xff]  ;;  %v925_v13 = vld [vmem:[%s1105_s7 + $0x28] sm:$0xff]  ;;  %vm626_vm1 = vcmask 261120   ;;  %p910_p11 = scmp.ne.s32.totalorder %s1024_s14, 3 }
  0x26   : > { %v935_v6 = vld [vmem:[%s1105_s7 + $0x78] sm:$0xff]  ;;  %568 = vmatpush.bf16.msra.mxu0 %v927_v5  ;;  %v934_v10 = vld [vmem:[%s1105_s7 + $0x70] sm:$0xff]  ;;  %v933_v14 = vld [vmem:[%s1105_s7 + $0x68] sm:$0xff] }
  0x27   : > { %v943_v7 = vld [vmem:[%s1105_s7 + $0xb8] sm:$0xff]  ;;  %582 = vmatpush.bf16.msra.mxu1 %v935_v6  ;;  %v942_v11 = vld [vmem:[%s1105_s7 + $0xb0] sm:$0xff]  ;;  %v941_v15 = vld [vmem:[%s1105_s7 + $0xa8] sm:$0xff] }
  0x28   : > { %v951_v8 = vld [vmem:[%s1105_s7 + $0xf8] sm:$0xff]  ;;  %596 = vmatpush.bf16.msra.mxu2 %v943_v7  ;;  %v950_v12 = vld [vmem:[%s1105_s7 + $0xf0] sm:$0xff]  ;;  %v949_v16 = vld [vmem:[%s1105_s7 + $0xe8] sm:$0xff] }
  0x29   : > { %610 = vmatpush.bf16.msra.mxu3 %v951_v8  ;;  %v924_v17 = vld [vmem:[%s1105_s7 + $0x20] sm:$0xff]  ;;  %v923_v21 = vld [vmem:[%s1105_s7 + $0x18] sm:$0xff]  ;;  %v922_v25 = vld [vmem:[%s1105_s7 + $0x10] sm:$0xff] }
  0x2a   : > { %569 = vmatpush.bf16.msra.mxu0 %v926_v9  ;;  %v932_v18 = vld [vmem:[%s1105_s7 + $0x60] sm:$0xff]  ;;  %v931_v22 = vld [vmem:[%s1105_s7 + $0x58] sm:$0xff]  ;;  %v930_v26 = vld [vmem:[%s1105_s7 + $0x50] sm:$0xff] }
  0x2b   : > { %583 = vmatpush.bf16.msra.mxu1 %v934_v10  ;;  %v940_v19 = vld [vmem:[%s1105_s7 + $0xa0] sm:$0xff]  ;;  %v939_v23 = vld [vmem:[%s1105_s7 + $0x98] sm:$0xff]  ;;  %v938_v27 = vld [vmem:[%s1105_s7 + $0x90] sm:$0xff] }
  0x2c   : > { %597 = vmatpush.bf16.msra.mxu2 %v942_v11  ;;  %v948_v20 = vld [vmem:[%s1105_s7 + $0xe0] sm:$0xff]  ;;  %v947_v24 = vld [vmem:[%s1105_s7 + $0xd8] sm:$0xff]  ;;  %v946_v28 = vld [vmem:[%s1105_s7 + $0xd0] sm:$0xff] }
  0x2d   : > { %611 = vmatpush.bf16.msra.mxu3 %v950_v12  ;;  %v921_v29 = vld [vmem:[%s1105_s7 + $0x8] sm:$0xff]  ;;  %v920_v33 = vld [vmem:[%s1105_s7] sm:$0xff]  ;;  %v768_v37 = vld [vmem:[%s1107_s8] sm:$0xf] }
  0x2e   : > { %570 = vmatpush.bf16.msra.mxu0 %v925_v13  ;;  %v929_v30 = vld [vmem:[%s1105_s7 + $0x48] sm:$0xff]  ;;  %v928_v34 = vld [vmem:[%s1105_s7 + $0x40] sm:$0xff]  ;;  %v916_v39 = vld [vmem:[%s1107_s8 + $0x4] sm:$0xf] }
  0x2f   : > { %584 = vmatpush.bf16.msra.mxu1 %v933_v14  ;;  %v937_v31 = vld [vmem:[%s1105_s7 + $0x88] sm:$0xff]  ;;  %v936_v35 = vld [vmem:[%s1105_s7 + $0x80] sm:$0xff]  ;;  %v776_v41 = vld [vmem:[%s1107_s8 + $0x8] sm:$0xf] }
  0x30   : > { %598 = vmatpush.bf16.msra.mxu2 %v941_v15  ;;  %v945_v32 = vld [vmem:[%s1105_s7 + $0xc8] sm:$0xff]  ;;  %v944_v36 = vld [vmem:[%s1105_s7 + $0xc0] sm:$0xff]  ;;  %v917_v43 = vld [vmem:[%s1107_s8 + $0xc] sm:$0xf] }
  0x31   : > { %612 = vmatpush.bf16.msra.mxu3 %v949_v16  ;;  %v918_v38 = vld [vmem:[%s1107_s8 + $0xc] sm:$0xf0]  ;;  %v770_v40 = vld [vmem:[%s1107_s8 + $0x10] sm:$0xf0]  ;;  %v919_v42 = vld [vmem:[%s1107_s8 + $0x14] sm:$0xf0] }
  0x32   : > { %571 = vmatpush.bf16.msra.mxu0 %v924_v17  ;;  %v778_v44 = vld [vmem:[%s1107_s8 + $0x18] sm:$0xf0]  ;;  %v769_v45 = vor.u32 %v918_v38, %v768_v37  ;;  %v773_v46 = vor.u32 %v916_v39, %v770_v40  ;;  %v777_v47 = vor.u32 %v919_v42, %v776_v41  ;;  %v286_v55 = vld [vmem:[#allocation2] sm:$0xff] }
  0x33   : > { %585 = vmatpush.bf16.msra.mxu1 %v932_v18  ;;  %v781_v48 = vor.u32 %v917_v43, %v778_v44  ;;  %v287_v63 = vld [vmem:[#allocation2 + $0x8] sm:$0xff] }
  0x34   : > { %599 = vmatpush.bf16.msra.mxu2 %v940_v19 }
  0x35   : > { %613 = vmatpush.bf16.msra.mxu3 %v948_v20 }
  0x36   : > { %572 = vmatpush.bf16.msra.mxu0 %v923_v21 }
  0x37   : > { %586 = vmatpush.bf16.msra.mxu1 %v931_v22 }
  0x38   : > { %600 = vmatpush.bf16.msra.mxu2 %v939_v23 }
  0x39   : > { %614 = vmatpush.bf16.msra.mxu3 %v947_v24 }
  0x3a   : > { %573 = vmatpush.bf16.msra.mxu0 %v922_v25 }
  0x3b   : > { %587 = vmatpush.bf16.msra.mxu1 %v930_v26 }
  0x3c   : > { %601 = vmatpush.bf16.msra.mxu2 %v938_v27 }
  0x3d   : > { %615 = vmatpush.bf16.msra.mxu3 %v946_v28 }
  0x3e   : > { %574 = vmatpush.bf16.msra.mxu0 %v921_v29 }
  0x3f   : > { %588 = vmatpush.bf16.msra.mxu1 %v929_v30 }
  0x40   : > { %602 = vmatpush.bf16.msra.mxu2 %v937_v31 }
  0x41   : > { %616 = vmatpush.bf16.msra.mxu3 %v945_v32 }
  0x42   : > { %575 = vmatpush.bf16.msra.mxu0 %v920_v33 }
  0x43   : > { %589 = vmatpush.bf16.msra.mxu1 %v928_v34 }
  0x44   : > { %603 = vmatpush.bf16.msra.mxu2 %v936_v35 }
  0x45   : > { %617 = vmatpush.bf16.msra.mxu3 %v944_v36  ;;  %576 = vmatmul.bf16.vlgmr.msra.gmra.mxu0 %v769_v45 }
  0x46   : > { %590 = vmatmul.bf16.vlgmr.msra.gmra.mxu1 %v773_v46 }
  0x47   : > { %604 = vmatmul.bf16.vlgmr.msra.gmra.mxu2 %v777_v47 }
  0x48   : > { %618 = vmatmul.bf16.vlgmr.msra.gmra.mxu3 %v781_v48 }
  0xc2   : > { %v577_v49 = vpop.f32.mrf.mxu0 }
  0xc3   : > { %v591_v50 = vpop.f32.mrf.mxu1 }
  0xc4   : > { %v592_v51 = vadd.f32 %v591_v50, %v577_v49 }
  0xca   : > { %v605_v52 = vpop.f32.mrf.mxu2  ;;  %v579_v57 = vpop.f32.mrf.mxu0 }
  0xcb   : > { %v619_v53 = vpop.f32.mrf.mxu3  ;;  %v606_v54 = vadd.f32 %v605_v52, %v592_v51  ;;  %v593_v58 = vpop.f32.mrf.mxu1 }
  0xcc   : > { %v594_v60 = vadd.f32 %v593_v58, %v579_v57 }
  0xcd   : > { %v620_v56 = vadd.f32 %v619_v53, %v606_v54 }
  0xcf   : > { %v624_v59 = vadd.f32 %v620_v56, %v286_v55 }
  0xd1   : > { %627 = vst.msk [vmem:[#allocation2] sm:$0xff] %vm626_vm1, %v624_v59 }
  0xd2   : > { %v607_v61 = vpop.f32.mrf.mxu2 }
  0xd3   : > { %v608_v62 = vadd.f32 %v607_v61, %v594_v60  ;;  %v621_v0 = vpop.f32.mrf.mxu3 }
  0xd5   : > { %v622_v1 = vadd.f32 %v621_v0, %v608_v62  ;;  %632 = sbr.rel (%p910_p11) target bundleno = 228 (0xe4), region = 63 }
  0xd7   : > { %v625_v2 = vadd.f32 %v622_v1, %v287_v63 }
  0xd9   : > { %628 = vst.msk [vmem:[#allocation2 + $0x8] sm:$0xff] %vm626_vm1, %v625_v2 }
  0xda   : > { %v633_v3 = vld [vmem:[#allocation2] sm:$0xff] }
  0xdb   : > { %v993_v4 = vld [vmem:[%s1181_s2] ss:$0 sm:$0xff] }
  0xdc   : > { %v639_v6 = vadd.f32 %v993_v4, %v633_v3 }
  0xde   : > { %641 = vst.msk [vmem:[%s1182_s3] sm:$0xff] %vm626_vm1, %v639_v6 }
  0xe0   : > { %v634_v5 = vld [vmem:[#allocation2 + $0x8] sm:$0xff] }
  0xe1   : > { %v640_v7 = vadd.f32 %v993_v4, %v634_v5 }
  0xe3   : > { %642 = vst.msk [vmem:[%s1182_s3 + $0x8] sm:$0xff] %vm626_vm1, %v640_v7 }
  0xe4 PF: > { %s13_s16 = sadd.s32 1, %s1032_s16   ;;  %s1183_s12 = smov %s1020_s13 }
  0xe5   : > { %p10_p12 = scmp.ge.s32.totalorder %s13_s16, 6   ;;  %s1184_s13 = smov %s1090_s20 }
  0xe6   : > { %s1185_s14 = smov %s1028_s15  ;;  %s1186_s15 = smov %s1188_s17 }
  0xe7   :  { %12 = sbr.rel (!%p10_p12) target bundleno = 3 (0x3), region = 104 }

</bundles_post_ra>
